<compile_context>
chip_gen: v7x
topology: tpu7x:2x2x1
jax: 0.10.0
libtpu: 0.0.40
codegen_flags: <defaults>
</compile_context>

<pallas_src>
import jax
import jax.numpy as jnp
from jax.experimental import pallas as pl
from jax.experimental.pallas import tpu as pltpu

_MIB = 1024 * 1024
_FUSED_VMEM_BUDGET = 40 * _MIB       # conservative vs v7x's 64 MiB physical VMEM
_RESIDENT_XZ_BUDGET = 16 * _MIB      # budget for the resident X / Z slab (2-stage)
_VMEM_LIMIT_CAP = 100 * _MIB


def _round_up(x, m):
    return ((x + m - 1) // m) * m


def _pad2(a, rows, cols):
    return jnp.pad(a, ((0, rows - a.shape[0]), (0, cols - a.shape[1])))


def _pick_block(npad, requested):
    """Largest tile <= requested that divides npad, keeping >= 2 row tiles."""
    b = max(128, min(requested, npad))
    while b > 128 and (npad % b != 0 or npad // b < 2):
        b //= 2
    if b < 128 or npad % b != 0:
        b = 128
    return b


def _two_stage_vmem_bytes(blk, npad, fpad, cpad, itm, resident_xz):
    xz = 2 * npad * fpad * itm if resident_xz else 2 * blk * fpad * itm
    k1 = (2 * blk * blk * itm + xz + 2 * blk * 128 * 4
          + 2 * blk * fpad * itm + blk * fpad * 4)
    k2 = (2 * blk * blk * itm + xz + 2 * fpad * cpad * itm + 2 * 8 * cpad * 4
          + 2 * blk * cpad * 4 + blk * fpad * 4)
    return max(k1, k2)


def _fused_vmem_bytes(npad, fpad, cpad, itm):
    # resident U, X, filter, W, bias, output + in-kernel Z/S temporaries.
    return (npad * npad * itm + npad * fpad * itm + npad * 128 * 4
            + fpad * cpad * itm + 8 * cpad * 4 + npad * cpad * 4
            + npad * fpad * (2 * 4 + itm))


def _vmem_limit(estimate_bytes):
    return int(min(max(estimate_bytes * 5 // 4 + 4 * _MIB, 32 * _MIB),
                   _VMEM_LIMIT_CAP))


# -----------------------------------------------------------------------------
# Fused single-kernel path (U resident in VMEM).  grid = (1,)
#   OUT = (U @ diag(g) @ (U^T @ X)) @ W^T + b      -- U read from HBM exactly once.
# -----------------------------------------------------------------------------
def _fused_kernel(u_ref, x_ref, filt_ref, w_ref, b_ref, o_ref):
    # Z = diag(g) (U^T X): lhs-dim-0 contraction avoids keeping a second (U^T)
    # copy resident in VMEM; the implied sub-tile transposes ride the idle XLU.
    z = jax.lax.dot_general(
        u_ref[...], x_ref[...],
        dimension_numbers=(((0,), (0,)), ((), ())),
        preferred_element_type=jnp.float32)
    z = (filt_ref[...] * z).astype(u_ref.dtype)
    s = jnp.dot(u_ref[...], z, preferred_element_type=jnp.float32)
    # fc epilogue: bf16 MXU operands, f32 accumulate, f32 bias.
    o_ref[...] = (jnp.dot(s.astype(w_ref.dtype), w_ref[...],
                          preferred_element_type=jnp.float32)
                  + b_ref[...]).astype(o_ref.dtype)


# -----------------------------------------------------------------------------
# Two-stage path, kernel 1:  Z = diag(g) @ (U^T @ X)     grid = (j_tiles, i_tiles)
#   i (node index, rows of U) is the reduction axis and is last -> "arbitrary".
#   Consumes a pre-transposed U^T so the dot is a plain [M,K]x[K,N] MXU feed.
# -----------------------------------------------------------------------------
def _make_project_kernel(block, x_resident):
    def kernel(ut_ref, x_ref, filt_ref, z_ref, acc_ref):
        i = pl.program_id(1)

        @pl.when(i == 0)
        def _():
            acc_ref[...] = jnp.zeros_like(acc_ref)

        if x_resident:
            start = pl.multiple_of(i * block, block)
            x_tile = x_ref[pl.ds(start, block), :]
        else:
            x_tile = x_ref[...]
        acc_ref[...] += jnp.dot(ut_ref[...], x_tile,
                                preferred_element_type=jnp.float32)

        @pl.when(i == pl.num_programs(1) - 1)
        def _():
            z_ref[...] = (filt_ref[...] * acc_ref[...]).astype(z_ref.dtype)

    return kernel


# -----------------------------------------------------------------------------
# Two-stage path, kernel 2:  OUT = (U @ Z) @ W^T + b     grid = (i_tiles, j_tiles)
#   j (eigenvector index, cols of U) is the reduction axis -> "arbitrary".
#   fc matmul + bias fused into the finalize step (once per output row tile).
# -----------------------------------------------------------------------------
def _make_recon_fc_kernel(block, z_resident):
    def kernel(u_ref, z_ref, w_ref, b_ref, o_ref, acc_ref):
        j = pl.program_id(1)

        @pl.when(j == 0)
        def _():
            acc_ref[...] = jnp.zeros_like(acc_ref)

        if z_resident:
            start = pl.multiple_of(j * block, block)
            z_tile = z_ref[pl.ds(start, block), :]
        else:
            z_tile = z_ref[...]
        acc_ref[...] += jnp.dot(u_ref[...], z_tile,
                                preferred_element_type=jnp.float32)

        @pl.when(j == pl.num_programs(1) - 1)
        def _():
            o_ref[...] = (jnp.dot(acc_ref[...].astype(w_ref.dtype), w_ref[...],
                                  preferred_element_type=jnp.float32)
                          + b_ref[...]).astype(o_ref.dtype)

    return kernel


# -----------------------------------------------------------------------------
# Wrapper (the HybridGNN forward hot path)
# -----------------------------------------------------------------------------
def hybrid_gnn_pallas(u_pad, ut_pad, x, lam_filter, fc_weight, fc_bias, *,
                      block=512, fused=None, resident_xz=None):
    """out = (U @ diag(lam_filter) @ (U^T @ x)) @ fc_weight^T + fc_bias.

    u_pad / ut_pad are the padded bf16 eigenvector matrix (and its transpose)
    produced once by spectral_setup -- no per-forward N^2 pad/cast traffic.
    """
    npad = u_pad.shape[0]
    n, f = x.shape
    c = fc_weight.shape[0]
    mm_dtype = u_pad.dtype
    itm = jnp.dtype(mm_dtype).itemsize
    fpad = _round_up(f, 128)      # lane-dense intermediate / stores
    cpad = _round_up(c, 128)      # lane-dense output stores

    # Small per-call padding (O(N*F) / O(F*C)); the O(N^2) work lives in setup.
    x_p = _pad2(x.astype(jnp.float32), npad, fpad).astype(mm_dtype)
    filt_p = _pad2(lam_filter.astype(jnp.float32)[:, None], npad, 1)
    wt_p = _pad2(fc_weight.astype(jnp.float32).T, fpad, cpad).astype(mm_dtype)
    b_p = _pad2(fc_bias.astype(jnp.float32)[None, :], 1, cpad)

    # ---- fused path: everything resident in VMEM, U read once ----------------
    fused_bytes = _fused_vmem_bytes(npad, fpad, cpad, itm)
    if fused is None:
        fused = fused_bytes <= _FUSED_VMEM_BUDGET

    if fused:
        out_p = pl.pallas_call(
            _fused_kernel,
            out_shape=jax.ShapeDtypeStruct((npad, cpad), jnp.float32),
            grid_spec=pltpu.PrefetchScalarGridSpec(
                num_scalar_prefetch=0,
                grid=(1,),
                in_specs=[
                    pl.BlockSpec((npad, npad), lambda i: (0, 0)),   # U (resident)
                    pl.BlockSpec((npad, fpad), lambda i: (0, 0)),   # X
                    pl.BlockSpec((npad, 1), lambda i: (0, 0)),      # filter column
                    pl.BlockSpec((fpad, cpad), lambda i: (0, 0)),   # fc W^T (bf16)
                    pl.BlockSpec((1, cpad), lambda i: (0, 0)),      # fc bias (f32)
                ],
                out_specs=pl.BlockSpec((npad, cpad), lambda i: (0, 0)),
            ),
            compiler_params=pltpu.CompilerParams(
                dimension_semantics=("arbitrary",),
                vmem_limit_bytes=_vmem_limit(fused_bytes)),
            cost_estimate=pl.CostEstimate(
                flops=int(4 * npad * npad * fpad + 2 * npad * fpad * cpad
                          + npad * fpad),
                transcendentals=0,
                bytes_accessed=int(npad * npad * itm + npad * fpad * itm
                                   + npad * 4 + fpad * cpad * itm + cpad * 4
                                   + npad * cpad * 4)),
        )(u_pad, x_p, filt_p, wt_p, b_p)
        return out_p[:n, :c]

    # ---- two-stage tiled path -------------------------------------------------
    blk = _pick_block(npad, block)
    nt = npad // blk
    if resident_xz is None:
        resident_xz = (2 * npad * fpad * itm) <= _RESIDENT_XZ_BUDGET

    cparams = pltpu.CompilerParams(
        dimension_semantics=("parallel", "arbitrary"),
        vmem_limit_bytes=_vmem_limit(
            _two_stage_vmem_bytes(blk, npad, fpad, cpad, itm, resident_xz)))

    if resident_xz:
        # Full-array block with a constant index_map: DMA'd once, then resident.
        x_spec = pl.BlockSpec((npad, fpad), lambda j, i: (0, 0))
        z_in_spec = pl.BlockSpec((npad, fpad), lambda i, j: (0, 0))
        xz_stream_bytes = npad * fpad * itm
    else:
        # Streamed fallback for graphs whose X/Z slab does not fit VMEM.
        x_spec = pl.BlockSpec((blk, fpad), lambda j, i: (i, 0))
        z_in_spec = pl.BlockSpec((blk, fpad), lambda i, j: (j, 0))
        xz_stream_bytes = nt * npad * fpad * itm

    # Kernel 1: Z = diag(g) @ (U^T @ X)
    z = pl.pallas_call(
        _make_project_kernel(blk, resident_xz),
        out_shape=jax.ShapeDtypeStruct((npad, fpad), mm_dtype),
        grid_spec=pltpu.PrefetchScalarGridSpec(
            num_scalar_prefetch=0,
            grid=(nt, nt),                                        # (j, i); i = reduction
            in_specs=[
                pl.BlockSpec((blk, blk), lambda j, i: (j, i)),    # U^T tile
                x_spec,                                           # X
                pl.BlockSpec((blk, 1), lambda j, i: (j, 0)),      # filter column
            ],
            out_specs=pl.BlockSpec((blk, fpad), lambda j, i: (j, 0)),
            scratch_shapes=[pltpu.VMEM((blk, fpad), jnp.float32)],
        ),
        compiler_params=cparams,
        cost_estimate=pl.CostEstimate(
            flops=int(2 * npad * npad * fpad + npad * fpad),
            transcendentals=0,
            bytes_accessed=int(npad * npad * itm + xz_stream_bytes + npad * 4
                               + npad * fpad * itm)),
    )(ut_pad, x_p, filt_p)

    # Kernel 2: OUT = (U @ Z) @ W^T + b
    out_p = pl.pallas_call(
        _make_recon_fc_kernel(blk, resident_xz),
        out_shape=jax.ShapeDtypeStruct((npad, cpad), jnp.float32),
        grid_spec=pltpu.PrefetchScalarGridSpec(
            num_scalar_prefetch=0,
            grid=(nt, nt),                                        # (i, j); j = reduction
            in_specs=[
                pl.BlockSpec((blk, blk), lambda i, j: (i, j)),    # U tile
                z_in_spec,                                        # Z
                pl.BlockSpec((fpad, cpad), lambda i, j: (0, 0)),  # fc W^T (bf16, resident)
                pl.BlockSpec((1, cpad), lambda i, j: (0, 0)),     # fc bias (f32, resident)
            ],
            out_specs=pl.BlockSpec((blk, cpad), lambda i, j: (i, 0)),
            scratch_shapes=[pltpu.VMEM((blk, fpad), jnp.float32)],
        ),
        compiler_params=cparams,
        cost_estimate=pl.CostEstimate(
            flops=int(2 * npad * npad * fpad + 2 * npad * fpad * cpad),
            transcendentals=0,
            bytes_accessed=int(npad * npad * itm + xz_stream_bytes
                               + fpad * cpad * itm + cpad * 4
                               + npad * cpad * 4)),
    )(u_pad, z, wt_p, b_p)

    return out_p[:n, :c]


# -----------------------------------------------------------------------------
# Precompute (SpectralGCN.__init__) — JAX/XLA glue, runs once per graph.
# The padded bf16 U and its transpose are built HERE so the hot path never pays
# the N^2 f32 read + bf16 write of a per-forward pad/cast.
# -----------------------------------------------------------------------------
def spectral_setup(edge_index, num_nodes, num_bins, *, pad_multiple=512,
                   mm_dtype=jnp.bfloat16):
    src, dst = edge_index[0], edge_index[1]
    a = jnp.zeros((num_nodes, num_nodes), jnp.float32).at[src, dst].add(1.0)
    deg = a.sum(axis=1)
    dinv = jnp.power(deg + 1e-10, -0.5)
    dinv = jnp.where(jnp.isinf(dinv), 0.0, dinv)
    lap = jnp.eye(num_nodes, dtype=jnp.float32) - dinv[:, None] * a * dinv[None, :]
    # TODO(synk): eigendecomposition has no Pallas equivalent; it is a one-time
    # host/XLA precompute (L is symmetric, so eigh matches scipy.eig up to order).
    lambdas, u = jnp.linalg.eigh(lap)
    lam_min, lam_max = lambdas.min(), lambdas.max()
    lam_norm = 2.0 * (lambdas - lam_min) / (lam_max - lam_min)
    bin_width = 2.0 / (num_bins - 1)          # matches the PyTorch module's binning
    bin_idx = jnp.clip((lam_norm / bin_width).astype(jnp.int32), 0, num_bins - 1)

    pad_multiple = _round_up(max(pad_multiple, 128), 128)
    npad = _round_up(num_nodes, pad_multiple)
    # TODO(synk): on v7x an fp8(e4m3)-scaled U / on v6e an int8 U would halve the
    # HBM stream further; kept bf16 here pending an accuracy budget.
    u_pad = _pad2(u, npad, npad).astype(mm_dtype)
    ut_pad = _pad2(u.T, npad, npad).astype(mm_dtype)
    return u_pad, ut_pad, bin_idx, u


def reference_forward(u, x, lam_filter, fc_weight, fc_bias, mm_dtype):
    """Pure-jnp reference mirroring the kernel's precision choices."""
    um = u.astype(mm_dtype)
    xm = x.astype(mm_dtype)
    z = jnp.dot(um.T, xm, preferred_element_type=jnp.float32)
    z = (lam_filter[:, None] * z).astype(mm_dtype)
    s = jnp.dot(um, z, preferred_element_type=jnp.float32)
    return jnp.dot(s.astype(mm_dtype), fc_weight.T.astype(mm_dtype),
                   preferred_element_type=jnp.float32) + fc_bias[None, :]


if __name__ == "__main__":
    num_nodes = 200          # deliberately not a multiple of 128: exercises padding
    num_features = 16
    num_classes = 8
    hidden_dim = 32          # unused: HybridGNN.forward never calls a SpatialGCN
    num_bins = 15
    k = num_nodes            # SpectralGCN keeps the full eigenbasis; k unused in forward

    key = jax.random.PRNGKey(0)
    k_x, k_f, k_w, k_b = jax.random.split(key, 4)

    # Node features [N, F]
    x = jax.random.normal(k_x, (num_nodes, num_features), jnp.float32)

    # Deterministic undirected graph (ring + chords), PyG edge_index layout [2, E].
    ring_src = jnp.arange(num_nodes, dtype=jnp.int32)
    ring_dst = (ring_src + 1) % num_nodes
    chord_src = jnp.arange(0, num_nodes, 7, dtype=jnp.int32)
    chord_dst = (chord_src * 5 + 3) % num_nodes
    src = jnp.concatenate([ring_src, chord_src])
    dst = jnp.concatenate([ring_dst, chord_dst])
    edge_index_spectral = jnp.stack(
        [jnp.concatenate([src, dst]), jnp.concatenate([dst, src])], axis=0)
    edge_index_spatial = edge_index_spectral   # ignored by HybridGNN.forward

    # Parameters (deterministic)
    filter_params = jax.random.normal(k_f, (num_bins,), jnp.float32)
    fc_weight = jax.random.normal(k_w, (num_classes, num_features), jnp.float32) * (
        1.0 / jnp.sqrt(num_features))
    fc_bias = jax.random.normal(k_b, (num_classes,), jnp.float32) * 0.01

    # One-time per-graph precompute (U pad/cast + U^T hoisted off the hot path).
    u_pad, ut_pad, bin_idx, u_f32 = spectral_setup(
        edge_index_spectral, num_nodes, num_bins, pad_multiple=128)
    lam_filter = filter_params[bin_idx]        # learnable-filter gather per forward

    ref = reference_forward(u_f32, x, lam_filter, fc_weight, fc_bias, jnp.bfloat16)

    def check(out, name):
        out = jax.block_until_ready(out)
        assert out.shape == (num_nodes, num_classes), (name, out.shape)
        err = float(jnp.max(jnp.abs(out - ref)))
        assert jnp.allclose(out, ref, atol=5e-2, rtol=5e-2), (name, err)

    # 1) auto path: small graph -> fused single kernel, U resident in VMEM.
    check(hybrid_gnn_pallas(u_pad, ut_pad, x, lam_filter, fc_weight, fc_bias),
          "fused")
    # 2) production two-stage path with VMEM-resident X / Z.
    check(hybrid_gnn_pallas(u_pad, ut_pad, x, lam_filter, fc_weight, fc_bias,
                            block=128, fused=False, resident_xz=True),
          "two_stage_resident")
    # 3) two-stage fallback with streamed X / Z (very large graphs).
    check(hybrid_gnn_pallas(u_pad, ut_pad, x, lam_filter, fc_weight, fc_bias,
                            block=128, fused=False, resident_xz=False),
          "two_stage_streamed")

    print("KERNEL_OK")
</pallas_src>

<mosaic_0001>
module attributes {stable_mosaic.version = 11 : i64} {
  func.func @_fused_kernel(%arg0: i32, %arg1: memref<256x256xbf16, #tpu.memory_space<vmem>>, %arg2: memref<256x128xbf16, #tpu.memory_space<vmem>>, %arg3: memref<256x1xf32, #tpu.memory_space<vmem>>, %arg4: memref<128x128xbf16, #tpu.memory_space<vmem>>, %arg5: memref<1x128xf32, #tpu.memory_space<vmem>>, %arg6: memref<256x128xf32, #tpu.memory_space<vmem>>) attributes {dimension_semantics = [#tpu.dimension_semantics<arbitrary>], iteration_bounds = array<i64: 1>, scalar_prefetch = 0 : i64, scratch_operands = 0 : i64, tpu.core_type = #tpu.core_type<tc>, window_params = [{pipeline_mode = #tpu.pipeline_mode<synchronous>, transform_indices = @transform_0, window_bounds = array<i64: 256, 256>}, {pipeline_mode = #tpu.pipeline_mode<synchronous>, transform_indices = @transform_1, window_bounds = array<i64: 256, 128>}, {pipeline_mode = #tpu.pipeline_mode<synchronous>, transform_indices = @transform_2, window_bounds = array<i64: 256, 1>}, {pipeline_mode = #tpu.pipeline_mode<synchronous>, transform_indices = @transform_3, window_bounds = array<i64: 128, 128>}, {pipeline_mode = #tpu.pipeline_mode<synchronous>, transform_indices = @transform_4, window_bounds = array<i64: 1, 128>}, {pipeline_mode = #tpu.pipeline_mode<synchronous>, transform_indices = @transform_5, window_bounds = array<i64: 256, 128>}]} {
    %c0 = arith.constant 0 : index
    %c0_0 = arith.constant 0 : index
    %0 = vector.load %arg1[%c0, %c0_0] : memref<256x256xbf16, #tpu.memory_space<vmem>>, vector<256x256xbf16>
    %c0_1 = arith.constant 0 : index
    %c0_2 = arith.constant 0 : index
    %1 = vector.load %arg2[%c0_1, %c0_2] : memref<256x128xbf16, #tpu.memory_space<vmem>>, vector<256x128xbf16>
    %cst = arith.constant dense<0.000000e+00> : vector<256x128xf32>
    %2 = tpu.matmul %0, %1, %cst {dimension_numbers = #tpu.dot_dimension_numbers<[0], [0], [1], [1], [0, 1, 1, 1], [], []>} : vector<256x256xbf16>, vector<256x128xbf16>, vector<256x128xf32> -> vector<256x128xf32>
    %c0_3 = arith.constant 0 : index
    %c0_4 = arith.constant 0 : index
    %3 = vector.load %arg3[%c0_3, %c0_4] : memref<256x1xf32, #tpu.memory_space<vmem>>, vector<256x1xf32>
    %4 = vector.broadcast %3 : vector<256x1xf32> to vector<256x128xf32>
    %5 = arith.mulf %4, %2 : vector<256x128xf32>
    %6 = arith.truncf %5 : vector<256x128xf32> to vector<256x128xbf16>
    %c0_5 = arith.constant 0 : index
    %c0_6 = arith.constant 0 : index
    %7 = vector.load %arg1[%c0_5, %c0_6] : memref<256x256xbf16, #tpu.memory_space<vmem>>, vector<256x256xbf16>
    %cst_7 = arith.constant dense<0.000000e+00> : vector<256x128xf32>
    %8 = tpu.matmul %7, %6, %cst_7 {dimension_numbers = #tpu.dot_dimension_numbers<[1], [0], [0], [1], [0, 0, 1, 1], [], []>} : vector<256x256xbf16>, vector<256x128xbf16>, vector<256x128xf32> -> vector<256x128xf32>
    %9 = arith.truncf %8 : vector<256x128xf32> to vector<256x128xbf16>
    %c0_8 = arith.constant 0 : index
    %c0_9 = arith.constant 0 : index
    %10 = vector.load %arg4[%c0_8, %c0_9] : memref<128x128xbf16, #tpu.memory_space<vmem>>, vector<128x128xbf16>
    %cst_10 = arith.constant dense<0.000000e+00> : vector<256x128xf32>
    %11 = tpu.matmul %9, %10, %cst_10 {dimension_numbers = #tpu.dot_dimension_numbers<[1], [0], [0], [1], [0, 0, 1, 1], [], []>} : vector<256x128xbf16>, vector<128x128xbf16>, vector<256x128xf32> -> vector<256x128xf32>
    %c0_11 = arith.constant 0 : index
    %c0_12 = arith.constant 0 : index
    %12 = vector.load %arg5[%c0_11, %c0_12] : memref<1x128xf32, #tpu.memory_space<vmem>>, vector<1x128xf32>
    %13 = vector.broadcast %12 : vector<1x128xf32> to vector<256x128xf32>
    %14 = arith.addf %11, %13 : vector<256x128xf32>
    %c0_13 = arith.constant 0 : index
    %c0_14 = arith.constant 0 : index
    %15 = vector.load %arg6[%c0_13, %c0_14] : memref<256x128xf32, #tpu.memory_space<vmem>>, vector<256x128xf32>
    tpu.vector_store %arg6[%c0_13, %c0_14], %14 {strides = array<i32>} : memref<256x128xf32, #tpu.memory_space<vmem>>, vector<256x128xf32>,
    return
  }
  func.func @transform_0(%arg0: i32) -> (i32, i32) {
    %c0_i32 = arith.constant 0 : i32
    %c0_i32_0 = arith.constant 0 : i32
    %c0_i32_1 = arith.constant 0 : i32
    return %c0_i32, %c0_i32_0 : i32, i32
  }
  func.func @transform_1(%arg0: i32) -> (i32, i32) {
    %c0_i32 = arith.constant 0 : i32
    %c0_i32_0 = arith.constant 0 : i32
    %c0_i32_1 = arith.constant 0 : i32
    return %c0_i32, %c0_i32_0 : i32, i32
  }
  func.func @transform_2(%arg0: i32) -> (i32, i32) {
    %c0_i32 = arith.constant 0 : i32
    %c0_i32_0 = arith.constant 0 : i32
    %c0_i32_1 = arith.constant 0 : i32
    return %c0_i32, %c0_i32_0 : i32, i32
  }
  func.func @transform_3(%arg0: i32) -> (i32, i32) {
    %c0_i32 = arith.constant 0 : i32
    %c0_i32_0 = arith.constant 0 : i32
    %c0_i32_1 = arith.constant 0 : i32
    return %c0_i32, %c0_i32_0 : i32, i32
  }
  func.func @transform_4(%arg0: i32) -> (i32, i32) {
    %c0_i32 = arith.constant 0 : i32
    %c0_i32_0 = arith.constant 0 : i32
    %c0_i32_1 = arith.constant 0 : i32
    return %c0_i32, %c0_i32_0 : i32, i32
  }
  func.func @transform_5(%arg0: i32) -> (i32, i32) {
    %c0_i32 = arith.constant 0 : i32
    %c0_i32_0 = arith.constant 0 : i32
    %c0_i32_1 = arith.constant 0 : i32
    return %c0_i32, %c0_i32_0 : i32, i32
  }
}

</mosaic_0001>

<bundles_post_ra>
// kernel: tpu_custom_call.1
= control target key start
LH: loop header
LB: loop body
LE: loop exit
PB: predicated region body
PF: predicated region fallthrough
CT: control target
= control target key end

     0   :  { %10 = vsyncpa [#allocation3], 0  ;;  %s2371_s0 = inlined_call_operand.vmem [shape: bf16[256,256], index: 0, kind: input, shape index: {}]   ;;  %s2372_s1 = inlined_call_operand.hbm [shape: bf16[256,128], index: 1, kind: input, shape index: {}]   ;;  %s2373_s2 = inlined_call_operand.vmem [shape: f32[256,1], index: 2, kind: input, shape index: {}]   ;;  %s2374_s3 = inlined_call_operand.hbm [shape: bf16[128,128], index: 3, kind: input, shape index: {}]   ;;  %s2375_s4 = inlined_call_operand.vmem [shape: f32[1,128], index: 4, kind: input, shape index: {}]   ;;  %s2376_s5 = inlined_call_operand.hbm [shape: f32[256,128], index: 5, kind: output, shape index: {}]  }
   0x1   :  { %11 = vsyncpa [#allocation6], 0 }
   0x2   :  { %12 = vsyncpa [#allocation4], 0  ;;  %s1826_s18 = smov [#allocation2]   ;;  %s1754_s22 = scalar_lea.hbm %s2372_s1, 2048 }
   0x3   :  { %s20_s19 = sshll.u32 %s1826_s18, 4  ;;  %p1755_p0 = scmp.ne.s32.totalorder %s2372_s1, %s1754_s22  ;;  %s21_s19 = int_to_ptr.vmem [resolvable:$true] %s20_s19 }
   0x4   :  { %p1758_p1 = scmp.lt.u32.totalorder %s1754_s22, %s2372_s1 }
   0x6   :  { %p1760_p2 = pnand %p1758_p1, %p1755_p0 }
   0x8   :  { %1763 = shalt.err (!%p1760_p2)
}
   0x9   :  { %s1764_s27 = scalar_lea.vmem %s21_s19, 2048  ;;  %p1769_p4 = scmp.lt.s32.totalorder %s21_s19, %s21_s19 }
   0xa   :  { %p1765_p3 = scmp.ne.s32.totalorder %s21_s19, %s1764_s27  ;;  %p1770_p5 = scmp.lt.s32.totalorder %s1764_s27, %s1764_s27 }
   0xc   :  { %p1771_p6 = por %p1770_p5, %p1769_p4 }
   0xe   :  { %p1772_p7 = pnand %p1771_p6, %p1765_p3 }
  0x10   :  { %1775 = shalt.err (!%p1772_p7)
}
  0x11   :  { %s1827_s28 = smov 64   ;;  %s1828_s29 = smov 4  }
  0x12   :  { %26 = dma.hbm_to_vmem [thread:$0]  %s2372_s1, 2048, %s21_s19, [#allocation3], %s1827_s28, %s1827_s28, %s1828_s29  }
  0x13   :  { %s1829_s7 = smov [#allocation5]   ;;  %s1776_s11 = scalar_lea.hbm %s2374_s3, 1024 }
  0x14   :  { %s34_s8 = sshll.u32 %s1829_s7, 4  ;;  %p1777_p8 = scmp.ne.s32.totalorder %s2374_s3, %s1776_s11  ;;  %s35_s8 = int_to_ptr.vmem [resolvable:$true] %s34_s8 }
  0x15   :  { %p1780_p9 = scmp.lt.u32.totalorder %s1776_s11, %s2374_s3 }
  0x17   :  { %p1782_p10 = pnand %p1780_p9, %p1777_p8 }
  0x19   :  { %1785 = shalt.err (!%p1782_p10)
}
  0x1a   :  { %s1786_s16 = scalar_lea.vmem %s35_s8, 1024  ;;  %p1791_p12 = scmp.lt.s32.totalorder %s35_s8, %s35_s8 }
  0x1b   :  { %p1787_p11 = scmp.ne.s32.totalorder %s35_s8, %s1786_s16  ;;  %p1792_p13 = scmp.lt.s32.totalorder %s1786_s16, %s1786_s16 }
  0x1d   :  { %p1793_p0 = por %p1792_p13, %p1791_p12 }
  0x1f   :  { %p1794_p1 = pnand %p1793_p0, %p1787_p11 }
  0x21   :  { %1797 = shalt.err (!%p1794_p1)
}
  0x22   :  { %40 = dma.hbm_to_vmem [thread:$0]  %s2374_s3, 1024, %s35_s8, [#allocation6], %s1827_s28, %s1827_s28, %s1828_s29  }
  0x23   :  { %1820 = dma.done.wait [#allocation3], 2048  }
  0x24   :  { %1821 = vsyncadd [#allocation3], 4294965248 }
  0x25   :  { %1822 = dma.done.wait [#allocation6], 1024  }
  0x26   :  { %1823 = vsyncadd [#allocation6], 4294966272  ;;  %v1673_v0 = vld [vmem:[%s2371_s0 + $0x80] ss:$8 sps:$4 sm:$0xff]   ;;  %v1677_v2 = vld [vmem:[%s2371_s0 + $0x90] ss:$8 sps:$4 sm:$0xff]  }
  0x27   :  { %v1675_v1 = vld [vmem:[%s2371_s0] ss:$8 sps:$4 sm:$0xff]   ;;  %306 = vxpose.xlu0.c.b16.start [1/8] %v1673_v0, 128  ;;  %v1680_v3 = vld [vmem:[%s2371_s0 + $0x10] ss:$8 sps:$4 sm:$0xff]   ;;  %v1958_v21 = vld [vmem:[%s2371_s0 + $0x84] ss:$8 sps:$4 sm:$0xff]  }
  0x28   :  { %274 = vxpose.xlu1.c.b16.start [1/8] %v1675_v1, 128  ;;  %v1683_v4 = vld [vmem:[%s2371_s0 + $0xa0] ss:$8 sps:$4 sm:$0xff]   ;;  %v1689_v6 = vld [vmem:[%s2371_s0 + $0xb0] ss:$8 sps:$4 sm:$0xff]   ;;  %2390 = vst [vmem:[#allocation13_spill] sm:$0xff] %v1958_v21  ;;  %v1830_v49 = vmov 0  }
  0x29   :  { %v1906_v5 = vld [vmem:[%s2371_s0 + $0x20] ss:$8 sps:$4 sm:$0xff]   ;;  %v1915_v7 = vld [vmem:[%s2371_s0 + $0x30] ss:$8 sps:$4 sm:$0xff]   ;;  %v1965_v24 = vld [vmem:[%s2371_s0 + $0x4] ss:$8 sps:$4 sm:$0xff]  }
  0x2a   :  { %v1695_v8 = vld [vmem:[%s2371_s0 + $0xc0] ss:$8 sps:$4 sm:$0xff]   ;;  %v1701_v10 = vld [vmem:[%s2371_s0 + $0xd0] ss:$8 sps:$4 sm:$0xff]   ;;  %v1970_v25 = vld [vmem:[%s2371_s0 + $0x94] ss:$8 sps:$4 sm:$0xff]  }
  0x2b   :  { %307 = vxpose.xlu0.c.b16.cont [2/8] %v1677_v2, 128  ;;  %v1924_v9 = vld [vmem:[%s2371_s0 + $0x40] ss:$8 sps:$4 sm:$0xff]   ;;  %v1933_v11 = vld [vmem:[%s2371_s0 + $0x50] ss:$8 sps:$4 sm:$0xff]   ;;  %2391 = vst [vmem:[#allocation14_spill] sm:$0xff] %v1970_v25 }
  0x2c   :  { %275 = vxpose.xlu1.c.b16.cont [2/8] %v1680_v3, 128  ;;  %v1707_v12 = vld [vmem:[%s2371_s0 + $0xe0] ss:$8 sps:$4 sm:$0xff]   ;;  %v1947_v16 = vld [vmem:[%s2371_s0 + $0xf0] ss:$8 sps:$4 sm:$0xff]   ;;  %v1976_v28 = vld [vmem:[%s2371_s0 + $0x14] ss:$8 sps:$4 sm:$0xff]  }
  0x2d   :  { %v1941_v13 = vld [vmem:[%s2371_s0 + $0x60] ss:$8 sps:$4 sm:$0xff]   ;;  %2388 = vst [vmem:[#allocation11_spill] sm:$0xff] %v1947_v16  ;;  %v1725_v19 = vld [vmem:[#allocation2 + $0x50] sm:$0xff]   ;;  %v1727_v23 = vld [vmem:[#allocation2 + $0x58] sm:$0xff]  }
  0x2e   :  { %v1721_v14 = vld [vmem:[#allocation2 + $0x40] sm:$0xff]   ;;  %v1723_v17 = vld [vmem:[#allocation2 + $0x48] sm:$0xff]   ;;  %v1953_v20 = vld [vmem:[%s2371_s0 + $0x70] ss:$8 sps:$4 sm:$0xff]  }
  0x2f   :  { %308 = vxpose.xlu0.c.b16.cont [3/8] %v1683_v4, 128  ;;  %v1722_v15 = vld [vmem:[#allocation2] sm:$0xff]   ;;  %1351 = vmatprep.subr.bf16.mxu0 %v1721_v14  ;;  %v1724_v18 = vld [vmem:[#allocation2 + $0x8] sm:$0xff]   ;;  %2389 = vst [vmem:[#allocation12_spill] sm:$0xff] %v1953_v20  ;;  %v1726_v22 = vld [vmem:[#allocation2 + $0x10] sm:$0xff]  }
  0x30   :  { %276 = vxpose.xlu1.c.b16.cont [3/8] %v1906_v5, 128  ;;  %1647 = vmatprep.subr.bf16.mxu1 %v1721_v14  ;;  %v1728_v26 = vld [vmem:[#allocation2 + $0x18] sm:$0xff]   ;;  %v1729_v27 = vld [vmem:[#allocation2 + $0x60] sm:$0xff]   ;;  %v1731_v32 = vld [vmem:[#allocation2 + $0x68] sm:$0xff]  }
  0x31   :  { %1352 = vmatpush3.bf16.msra.mxu0 %v1722_v15  ;;  %1655 = vmatpush3.bf16.msra.mxu1 %v1722_v15  ;;  %v1982_v29 = vld [vmem:[%s2371_s0 + $0xa4] ss:$8 sps:$4 sm:$0xff]   ;;  %v1994_v34 = vld [vmem:[%s2371_s0 + $0xb4] ss:$8 sps:$4 sm:$0xff]  }
  0x32   :  { %1353 = vmatprep.subr.bf16.mxu0 %v1723_v17  ;;  %1648 = vmatprep.subr.bf16.mxu1 %v1723_v17  ;;  %2392 = vst [vmem:[#allocation15_spill] sm:$0xff] %v1982_v29  ;;  %v1730_v30 = vld [vmem:[#allocation2 + $0x20] sm:$0xff]   ;;  %v1732_v33 = vld [vmem:[#allocation2 + $0x28] sm:$0xff]   ;;  %2393 = vst [vmem:[#allocation16_spill] sm:$0xff] %v1994_v34 }
  0x33   :  { %309 = vxpose.xlu0.c.b16.cont [4/8] %v1689_v6, 128  ;;  %v1987_v31 = vld [vmem:[%s2371_s0 + $0x24] ss:$8 sps:$4 sm:$0xff]   ;;  %v1733_v35 = vld [vmem:[#allocation2 + $0x70] sm:$0xff]   ;;  %v1735_v39 = vld [vmem:[#allocation2 + $0x78] sm:$0xff]  }
  0x34   :  { %277 = vxpose.xlu1.c.b16.cont [4/8] %v1915_v7, 128  ;;  %v2000_v36 = vld [vmem:[%s2371_s0 + $0x34] ss:$8 sps:$4 sm:$0xff]   ;;  %v2006_v38 = vld [vmem:[%s2371_s0 + $0xc4] ss:$8 sps:$4 sm:$0xff]  }
  0x35   :  { %1354 = vmatpush3.bf16.msra.mxu0 %v1724_v18  ;;  %1656 = vmatpush3.bf16.msra.mxu1 %v1724_v18  ;;  %v1734_v37 = vld [vmem:[#allocation2 + $0x30] sm:$0xff]   ;;  %2394 = vst [vmem:[#allocation17_spill] sm:$0xff] %v2006_v38  ;;  %v2012_v40 = vld [vmem:[%s2371_s0 + $0x44] ss:$8 sps:$4 sm:$0xff]   ;;  %v1736_v41 = vld [vmem:[#allocation2 + $0x38] sm:$0xff]  }
  0x36   :  { %1355 = vmatprep.subr.bf16.mxu0 %v1725_v19  ;;  %1649 = vmatprep.subr.bf16.mxu1 %v1725_v19  ;;  %v2018_v42 = vld [vmem:[%s2371_s0 + $0xd4] ss:$8 sps:$4 sm:$0xff]   ;;  %v2030_v44 = vld [vmem:[%s2371_s0 + $0xe4] ss:$8 sps:$4 sm:$0xff]  }
  0x37   :  { %310 = vxpose.xlu0.c.b16.cont [5/8] %v1695_v8, 128  ;;  %2395 = vst [vmem:[#allocation18_spill] sm:$0xff] %v2018_v42  ;;  %v2024_v43 = vld [vmem:[%s2371_s0 + $0x54] ss:$8 sps:$4 sm:$0xff]   ;;  %2396 = vst [vmem:[#allocation19_spill] sm:$0xff] %v2030_v44  ;;  %v2036_v45 = vld [vmem:[%s2371_s0 + $0x64] ss:$8 sps:$4 sm:$0xff]  }
  0x38   :  { %278 = vxpose.xlu1.c.b16.cont [5/8] %v1924_v9, 128  ;;  %v2042_v46 = vld [vmem:[%s2371_s0 + $0xf4] ss:$8 sps:$4 sm:$0xff]   ;;  %v612_v48 = vld [vmem:[%s2373_s2 + $0x88] sm:$0xff]  ;;  %v595_v50 = vld [vmem:[%s2373_s2] sm:$0xff] }
  0x39   :  { %1356 = vmatpush3.bf16.msra.mxu0 %v1726_v22  ;;  %1657 = vmatpush3.bf16.msra.mxu1 %v1726_v22  ;;  %2397 = vst [vmem:[#allocation20_spill] sm:$0xff] %v2042_v46  ;;  %v2048_v47 = vld [vmem:[%s2371_s0 + $0x74] ss:$8 sps:$4 sm:$0xff]   ;;  %v611_v51 = vld [vmem:[%s2373_s2 + $0x80] sm:$0xff]  ;;  %v596_v52 = vld [vmem:[%s2373_s2 + $0x8] sm:$0xff] }
  0x3a   :  { %1357 = vmatprep.subr.bf16.mxu0 %v1727_v23  ;;  %1650 = vmatprep.subr.bf16.mxu1 %v1727_v23  ;;  %2398 = vst [vmem:[#allocation21_spill] sm:$0xff] %v2048_v47  ;;  %v613_v53 = vld [vmem:[%s2373_s2 + $0x90] sm:$0xff]  ;;  %v614_v54 = vld [vmem:[%s2373_s2 + $0x98] sm:$0xff]  ;;  %v615_v57 = vld [vmem:[%s2373_s2 + $0xa0] sm:$0xff] }
  0x3b   :  { %311 = vxpose.xlu0.c.b16.cont [6/8] %v1701_v10, 128  ;;  %v597_v55 = vld [vmem:[%s2373_s2 + $0x10] sm:$0xff]  ;;  %v598_v56 = vld [vmem:[%s2373_s2 + $0x18] sm:$0xff]  ;;  %v616_v58 = vld [vmem:[%s2373_s2 + $0xa8] sm:$0xff] }
  0x3c   :  { %279 = vxpose.xlu1.c.b16.cont [6/8] %v1933_v11, 128  ;;  %v599_v59 = vld [vmem:[%s2373_s2 + $0x20] sm:$0xff]  ;;  %v600_v60 = vld [vmem:[%s2373_s2 + $0x28] sm:$0xff]  ;;  %v617_v61 = vld [vmem:[%s2373_s2 + $0xb0] sm:$0xff] }
  0x3d   :  { %1358 = vmatpush3.bf16.msra.mxu0 %v1728_v26  ;;  %1658 = vmatpush3.bf16.msra.mxu1 %v1728_v26  ;;  %v618_v62 = vld [vmem:[%s2373_s2 + $0xb8] sm:$0xff]  ;;  %v601_v63 = vld [vmem:[%s2373_s2 + $0x30] sm:$0xff]  ;;  %v619_v1 = vld [vmem:[%s2373_s2 + $0xc0] sm:$0xff] }
  0x3e   :  { %1359 = vmatprep.subr.bf16.mxu0 %v1729_v27  ;;  %1651 = vmatprep.subr.bf16.mxu1 %v1729_v27  ;;  %v602_v0 = vld [vmem:[%s2373_s2 + $0x38] sm:$0xff]  ;;  %v620_v2 = vld [vmem:[%s2373_s2 + $0xc8] sm:$0xff]  ;;  %v603_v3 = vld [vmem:[%s2373_s2 + $0x40] sm:$0xff] }
  0x3f   :  { %312 = vxpose.xlu0.c.b16.cont [7/8] %v1707_v12, 128  ;;  %v604_v8 = vld [vmem:[%s2373_s2 + $0x48] sm:$0xff]  ;;  %v621_v10 = vld [vmem:[%s2373_s2 + $0xd0] sm:$0xff]  ;;  %v622_v15 = vld [vmem:[%s2373_s2 + $0xd8] sm:$0xff] }
  0x40   :  { %280 = vxpose.xlu1.c.b16.cont [7/8] %v1941_v13, 128  ;;  %v605_v17 = vld [vmem:[%s2373_s2 + $0x50] sm:$0xff]  ;;  %v606_v22 = vld [vmem:[%s2373_s2 + $0x58] sm:$0xff]  ;;  %v623_v23 = vld [vmem:[%s2373_s2 + $0xe0] sm:$0xff] }
  0x41   :  { %1360 = vmatpush3.bf16.msra.mxu0 %v1730_v30  ;;  %1659 = vmatpush3.bf16.msra.mxu1 %v1730_v30  ;;  %v624_v30 = vld [vmem:[%s2373_s2 + $0xe8] sm:$0xff] }
  0x42   :  { %1361 = vmatprep.subr.bf16.mxu0 %v1731_v32  ;;  %1652 = vmatprep.subr.bf16.mxu1 %v1731_v32  ;;  %v607_v32 = vld [vmem:[%s2373_s2 + $0x60] sm:$0xff] }
  0x43   :  { %313 = vxpose.xlu0.c.b16.end [8/8] %v1947_v16, 128 }
  0x44   :  { %281 = vxpose.xlu1.c.b16.end [8/8] %v1953_v20, 128 }
  0x45   :  { %1362 = vmatpush3.bf16.msra.mxu0 %v1732_v33  ;;  %1660 = vmatpush3.bf16.msra.mxu1 %v1732_v33 }
  0x46   :  { %1363 = vmatprep.subr.bf16.mxu0 %v1733_v35  ;;  %1653 = vmatprep.subr.bf16.mxu1 %v1733_v35 }
  0x47   :  { %322 = vxpose.xlu0.c.b16.start [1/8] %v1958_v21, 128 }
  0x48   :  { %290 = vxpose.xlu1.c.b16.start [1/8] %v1965_v24, 128 }
  0x49   :  { %1364 = vmatpush3.bf16.msra.mxu0 %v1734_v37  ;;  %1661 = vmatpush3.bf16.msra.mxu1 %v1734_v37  ;;  %v608_v37 = vld [vmem:[%s2373_s2 + $0x68] sm:$0xff] }
  0x4a   :  { %1365 = vmatprep.subr.bf16.mxu0 %v1735_v39  ;;  %1654 = vmatprep.subr.bf16.mxu1 %v1735_v39  ;;  %v625_v39 = vld [vmem:[%s2373_s2 + $0xf0] sm:$0xff] }
  0x4b   :  { %323 = vxpose.xlu0.c.b16.cont [2/8] %v1970_v25, 128 }
  0x4c   :  { %291 = vxpose.xlu1.c.b16.cont [2/8] %v1976_v28, 128 }
  0x4d   :  { %1366 = vmatpush3.bf16.msra.mxu0 %v1736_v41  ;;  %1662 = vmatpush3.bf16.msra.mxu1 %v1736_v41 }
  0x4f   :  { %324 = vxpose.xlu0.c.b16.cont [3/8] %v1982_v29, 128 }
  0x50   :  { %292 = vxpose.xlu1.c.b16.cont [3/8] %v1987_v31, 128 }
  0x53   :  { %325 = vxpose.xlu0.c.b16.cont [4/8] %v1994_v34, 128 }
  0x54   :  { %293 = vxpose.xlu1.c.b16.cont [4/8] %v2000_v36, 128 }
  0x57   :  { %326 = vxpose.xlu0.c.b16.cont [5/8] %v2006_v38, 128 }
  0x58   :  { %294 = vxpose.xlu1.c.b16.cont [5/8] %v2012_v40, 128 }
  0x5b   :  { %327 = vxpose.xlu0.c.b16.cont [6/8] %v2018_v42, 128 }
  0x5c   :  { %295 = vxpose.xlu1.c.b16.cont [6/8] %v2024_v43, 128 }
  0x5f   :  { %328 = vxpose.xlu0.c.b16.cont [7/8] %v2030_v44, 128 }
  0x60   :  { %296 = vxpose.xlu1.c.b16.cont [7/8] %v2036_v45, 128 }
  0x63   :  { %329 = vxpose.xlu0.c.b16.end [8/8] %v2042_v46, 128 }
  0x64   :  { %297 = vxpose.xlu1.c.b16.end [8/8] %v2048_v47, 128 }
  0x68   :  { %1672 = vset.pattern.permute.xlu1 %v1830_v49 }
  0x69   :  { %714 = vperm.xlu1 %1672, %v612_v48  }
  0x6c   :  { %1671 = vset.pattern.permute.xlu0 %v1830_v49  ;;  %v626_v49 = vld [vmem:[%s2373_s2 + $0xf8] sm:$0xff] }
  0x6d   :  { %629 = vperm.xlu1 %1672, %v595_v50   ;;  %709 = vperm.xlu0 %1671, %v611_v51   ;;  %v609_v50 = vld [vmem:[%s2373_s2 + $0x70] sm:$0xff] }
  0x71   :  { %634 = vperm.xlu1 %1672, %v596_v52   ;;  %719 = vperm.xlu0 %1671, %v613_v53   ;;  %v610_v53 = vld [vmem:[%s2373_s2 + $0x78] sm:$0xff] }
  0x75   :  { %724 = vperm.xlu1 %1672, %v614_v54   ;;  %639 = vperm.xlu0 %1671, %v597_v55  }
  0x79   :  { %644 = vperm.xlu1 %1672, %v598_v56   ;;  %729 = vperm.xlu0 %1671, %v615_v57  }
  0x7d   :  { %734 = vperm.xlu1 %1672, %v616_v58   ;;  %649 = vperm.xlu0 %1671, %v599_v59  }
  0x81   :  { %654 = vperm.xlu1 %1672, %v600_v60   ;;  %739 = vperm.xlu0 %1671, %v617_v61  }
  0x85   :  { %744 = vperm.xlu1 %1672, %v618_v62   ;;  %659 = vperm.xlu0 %1671, %v601_v63  }
  0x89   :  { %664 = vperm.xlu1 %1672, %v602_v0   ;;  %749 = vperm.xlu0 %1671, %v619_v1  }
  0x8d   :  { %v314_v4 = vpop.trf.xlu0  ;;  %754 = vperm.xlu1 %1672, %v620_v2   ;;  %669 = vperm.xlu0 %1671, %v603_v3  }
  0x8e   :  { %466 = vmatprep.mubr.bf16.mxu0 %v314_v4  ;;  %v282_v6 = vpop.trf.xlu1 }
  0x8f   :  { %467 = vmatmul.mubr.bf16.vlgmr.msra.gmra.mrb[0].mxu0 %v282_v6 }
  0x91   :  { %v315_v12 = vpop.trf.xlu0  ;;  %674 = vperm.xlu1 %1672, %v604_v8   ;;  %759 = vperm.xlu0 %1671, %v621_v10  }
  0x92   :  { %v283_v14 = vpop.trf.xlu1  ;;  %474 = vmatprep.mubr.bf16.mxu0 %v315_v12 }
  0x95   :  { %v316_v18 = vpop.trf.xlu0  ;;  %764 = vperm.xlu1 %1672, %v622_v15   ;;  %679 = vperm.xlu0 %1671, %v605_v17  }
  0x96   :  { %v284_v19 = vpop.trf.xlu1 }
  0x97   :  { %475 = vmatmul.mubr.bf16.gmra.mrb[4].mxu0 %v283_v14 }
  0x98   :  { %482 = vmatprep.mubr.bf16.mxu0 %v316_v18 }
  0x99   :  { %v317_v26 = vpop.trf.xlu0  ;;  %684 = vperm.xlu1 %1672, %v606_v22   ;;  %769 = vperm.xlu0 %1671, %v623_v23  }
  0x9a   :  { %v285_v27 = vpop.trf.xlu1 }
  0x9d   :  { %v318_v33 = vpop.trf.xlu0  ;;  %774 = vperm.xlu1 %1672, %v624_v30   ;;  %689 = vperm.xlu0 %1671, %v607_v32  }
  0x9e   :  { %v286_v35 = vpop.trf.xlu1 }
  0x9f   :  { %483 = vmatmul.mubr.bf16.gmra.mrb[8].mxu0 %v284_v19 }
  0xa0   :  { %490 = vmatprep.mubr.bf16.mxu0 %v317_v26 }
  0xa1   :  { %v319_v41 = vpop.trf.xlu0  ;;  %694 = vperm.xlu1 %1672, %v608_v37   ;;  %779 = vperm.xlu0 %1671, %v625_v39  }
  0xa2   :  { %v287_v48 = vpop.trf.xlu1 }
  0xa5   :  { %v320_v51 = vpop.trf.xlu0  ;;  %784 = vperm.xlu1 %1672, %v626_v49   ;;  %699 = vperm.xlu0 %1671, %v609_v50  }
  0xa6   :  { %v288_v52 = vpop.trf.xlu1 }
  0xa7   :  { %491 = vmatmul.mubr.bf16.gmra.mrb[12].mxu0 %v285_v27 }
  0xa8   :  { %498 = vmatprep.mubr.bf16.mxu0 %v318_v33 }
  0xa9   :  { %v321_v54 = vpop.trf.xlu0  ;;  %704 = vperm.xlu1 %1672, %v610_v53  }
  0xaa   :  { %v289_v55 = vpop.trf.xlu1 }
  0xad   :  { %v330_v56 = vpop.trf.xlu0 }
  0xae   :  { %v298_v57 = vpop.trf.xlu1 }
  0xaf   :  { %499 = vmatmul.mubr.bf16.gmra.mrb[16].mxu0 %v286_v35 }
  0xb0   :  { %506 = vmatprep.mubr.bf16.mxu0 %v319_v41 }
  0xb1   :  { %v331_v58 = vpop.trf.xlu0 }
  0xb2   :  { %v299_v59 = vpop.trf.xlu1 }
  0xb5   :  { %v332_v60 = vpop.trf.xlu0 }
  0xb6   :  { %v300_v61 = vpop.trf.xlu1 }
  0xb7   :  { %507 = vmatmul.mubr.bf16.gmra.mrb[20].mxu0 %v287_v48 }
  0xb8   :  { %514 = vmatprep.mubr.bf16.mxu0 %v320_v51 }
  0xb9   :  { %v333_v62 = vpop.trf.xlu0 }
  0xba   :  { %v301_v63 = vpop.trf.xlu1 }
  0xbd   :  { %v334_v0 = vpop.trf.xlu0 }
  0xbe   :  { %562 = vmatprep.mubr.bf16.mxu1 %v334_v0  ;;  %v302_v1 = vpop.trf.xlu1 }
  0xbf   :  { %515 = vmatmul.mubr.bf16.gmra.mrb[24].mxu0 %v288_v52  ;;  %563 = vmatmul.mubr.bf16.vlgmr.msra.gmra.mrb[0].mxu1 %v302_v1 }
  0xc0   :  { %522 = vmatprep.mubr.bf16.mxu0 %v321_v54 }
  0xc1   :  { %v335_v2 = vpop.trf.xlu0 }
  0xc2   :  { %570 = vmatprep.mubr.bf16.mxu1 %v335_v2  ;;  %v303_v3 = vpop.trf.xlu1 }
  0xc5   :  { %v336_v4 = vpop.trf.xlu0 }
  0xc6   :  { %v304_v6 = vpop.trf.xlu1 }
  0xc7   :  { %523 = vmatmul.mubr.bf16.gmra.mrb[28].mxu0 %v289_v55  ;;  %571 = vmatmul.mubr.bf16.gmra.mrb[4].mxu1 %v303_v3 }
  0xc8   :  { %530 = vmatprep.mubr.bf16.mxu0 %v330_v56  ;;  %578 = vmatprep.mubr.bf16.mxu1 %v336_v4 }
  0xc9   :  { %v337_v8 = vpop.trf.xlu0 }
  0xca   :  { %v305_v10 = vpop.trf.xlu1 }
  0xcf   :  { %531 = vmatmul.mubr.bf16.gmra.mrb[32].mxu0 %v298_v57  ;;  %579 = vmatmul.mubr.bf16.gmra.mrb[8].mxu1 %v304_v6 }
  0xd0   :  { %538 = vmatprep.mubr.bf16.mxu0 %v331_v58  ;;  %586 = vmatprep.mubr.bf16.mxu1 %v337_v8 }
  0xd7   :  { %539 = vmatmul.mubr.bf16.gmra.mrb[36].mxu0 %v299_v59  ;;  %587 = vmatmul.mubr.bf16.gmra.mrb[12].mxu1 %v305_v10 }
  0xd8   :  { %546 = vmatprep.mubr.bf16.mxu0 %v332_v60  ;;  %867 = vmatprep.mubr.bf16.mxu1 %v1965_v24 }
  0xdf   :  { %547 = vmatmul.mubr.bf16.gmra.mrb[40].mxu0 %v300_v61 }
  0xe0   :  { %554 = vmatprep.mubr.bf16.mxu0 %v333_v62 }
  0xe7   :  { %555 = vmatmul.mubr.bf16.gmra.mrb[44].mxu0 %v301_v63 }
  0xe8   :  { %v2150_v12 = vpop.permute.xlu1 %714 }
  0xec   :  { %v630_v14 = vpop.permute.xlu1 %629  ;;  %v2152_v15 = vpop.permute.xlu0 %709 }
  0xf0   :  { %v635_v17 = vpop.permute.xlu1 %634  ;;  %v2154_v18 = vpop.permute.xlu0 %719 }
  0xf4   :  { %v2156_v19 = vpop.permute.xlu1 %724  ;;  %v640_v22 = vpop.permute.xlu0 %639 }
  0xf8   :  { %v645_v23 = vpop.permute.xlu1 %644  ;;  %v2158_v26 = vpop.permute.xlu0 %729 }
  0xfc   :  { %v2160_v27 = vpop.permute.xlu1 %734  ;;  %v650_v24 = vpop.permute.xlu0 %649 }
 0x100   :  { %v655_v30 = vpop.permute.xlu1 %654  ;;  %v2162_v48 = vpop.permute.xlu0 %739 }
 0x104   :  { %v2164_v49 = vpop.permute.xlu1 %744  ;;  %v660_v57 = vpop.permute.xlu0 %659 }
 0x108   :  { %v665_v59 = vpop.permute.xlu1 %664  ;;  %v750_v1 = vpop.permute.xlu0 %749 }
 0x10c   :  { %v755_v3 = vpop.permute.xlu1 %754 }
 0x162   :  { %v1367_v32 = vpop.f32.mrb[0].mxu0 }
 0x163   :  { %v1368_v33 = vpop.f32.mrb[1].mxu0 }
 0x164   :  { %v1369_v35 = vadd.f32 %v1368_v33, %v1367_v32  ;;  %v1370_v37 = vpop.f32.mrb[2].mxu0  ;;  %v670_v32 = vpop.permute.xlu0 %669 }
 0x165   :  { %v1371_v39 = vpop.f32.mrb[3].mxu0 }
 0x166   :  { %v1372_v41 = vadd.f32 %v1371_v39, %v1370_v37  ;;  %v2166_v50 = vmul.f32 %v1369_v35, %v630_v14 }
 0x168   :  { %v2168_v51 = vmul.f32 %v1372_v41, %v635_v17 }
 0x16a   :  { %v1373_v53 = vpop.f32.mrb[4].mxu0 }
 0x16b   :  { %v1374_v54 = vpop.f32.mrb[5].mxu0 }
 0x16c   :  { %v1375_v55 = vadd.f32 %v1374_v54, %v1373_v53  ;;  %v1376_v56 = vpop.f32.mrb[6].mxu0  ;;  %v2184_v54 = vpop.permute.xlu0 %759 }
 0x16d   :  { %v1377_v58 = vpop.f32.mrb[7].mxu0 }
 0x16e   :  { %v1378_v60 = vadd.f32 %v1377_v58, %v1376_v56  ;;  %v2172_v61 = vmul.f32 %v1375_v55, %v640_v22  ;;  %v675_v22 = vpop.permute.xlu1 %674 }
 0x170   :  { %v2174_v62 = vmul.f32 %v1378_v60, %v645_v23 }
 0x172   :  { %v1379_v0 = vpop.f32.mrb[8].mxu0  ;;  %v2186_v55 = vpop.permute.xlu1 %764 }
 0x173   :  { %v1380_v2 = vpop.f32.mrb[9].mxu0 }
 0x174   :  { %v1381_v4 = vadd.f32 %v1380_v2, %v1379_v0  ;;  %v1382_v6 = vpop.f32.mrb[10].mxu0 }
 0x175   :  { %v1383_v8 = vpop.f32.mrb[11].mxu0 }
 0x176   :  { %v1384_v10 = vadd.f32 %v1383_v8, %v1382_v6  ;;  %v2178_v14 = vmul.f32 %v1381_v4, %v650_v24  ;;  %v680_v4 = vpop.permute.xlu0 %679  ;;  %v685_v6 = vpop.permute.xlu1 %684 }
 0x178   :  { %v2180_v17 = vmul.f32 %v1384_v10, %v655_v30 }
 0x17a   :  { %v1385_v33 = vpop.f32.mrb[12].mxu0 }
 0x17b   :  { %v1386_v35 = vpop.f32.mrb[13].mxu0 }
 0x17c   :  { %v1387_v37 = vadd.f32 %v1386_v35, %v1385_v33  ;;  %v1388_v39 = vpop.f32.mrb[14].mxu0 }
 0x17d   :  { %v1389_v41 = vpop.f32.mrb[15].mxu0 }
 0x17e   :  { %v1390_v53 = vadd.f32 %v1389_v41, %v1388_v39  ;;  %v2188_v56 = vmul.f32 %v1387_v37, %v660_v57  ;;  %v2200_v37 = vpop.permute.xlu0 %769  ;;  %v2202_v39 = vpop.permute.xlu1 %774 }
 0x180   :  { %v2190_v24 = vmul.f32 %v1390_v53, %v665_v59 }
 0x182   :  { %v1391_v58 = vpop.f32.mrb[16].mxu0 }
 0x183   :  { %v1392_v60 = vpop.f32.mrb[17].mxu0 }
 0x184   :  { %v1393_v0 = vadd.f32 %v1392_v60, %v1391_v58  ;;  %v1394_v2 = vpop.f32.mrb[18].mxu0 }
 0x185   :  { %v1395_v8 = vpop.f32.mrb[19].mxu0 }
 0x186   :  { %v1396_v10 = vadd.f32 %v1395_v8, %v1394_v2  ;;  %v2194_v33 = vmul.f32 %v1393_v0, %v670_v32  ;;  %v695_v32 = vpop.permute.xlu1 %694 }
 0x188   :  { %v2196_v35 = vmul.f32 %v1396_v10, %v675_v22  ;;  %v690_v22 = vpop.permute.xlu0 %689 }
 0x18a   :  { %v1397_v59 = vpop.f32.mrb[20].mxu0  ;;  %v785_v0 = vpop.permute.xlu1 %784 }
 0x18b   :  { %v1398_v41 = vpop.f32.mrb[21].mxu0 }
 0x18c   :  { %v1399_v53 = vadd.f32 %v1398_v41, %v1397_v59  ;;  %v1400_v58 = vpop.f32.mrb[22].mxu0  ;;  %v780_v42 = vpop.permute.xlu0 %779 }
 0x18d   :  { %v1401_v60 = vpop.f32.mrb[23].mxu0 }
 0x18e   :  { %v1402_v30 = vadd.f32 %v1401_v60, %v1400_v58  ;;  %v2204_v23 = vmul.f32 %v1399_v53, %v680_v4 }
 0x190   :  { %v2206_v2 = vmul.f32 %v1402_v30, %v685_v6 }
 0x192   :  { %v1403_v8 = vpop.f32.mrb[24].mxu0  ;;  %v1439_v10 = vpop.f32.mrb[0].mxu1 }
 0x193   :  { %v1404_v57 = vpop.f32.mrb[25].mxu0  ;;  %v1440_v63 = vpop.f32.mrb[1].mxu1 }
 0x194   :  { %v1405_v52 = vadd.f32 %v1404_v57, %v1403_v8  ;;  %v1441_v16 = vadd.f32 %v1440_v63, %v1439_v10  ;;  %v1406_v46 = vpop.f32.mrb[26].mxu0  ;;  %v1442_v59 = vpop.f32.mrb[2].mxu1 }
 0x195   :  { %v1407_v41 = vpop.f32.mrb[27].mxu0  ;;  %v1443_v44 = vpop.f32.mrb[3].mxu1 }
 0x196   :  { %v2210_v58 = vmul.f32 %v1441_v16, %v750_v1  ;;  %v1408_v4 = vadd.f32 %v1407_v41, %v1406_v46  ;;  %v1444_v30 = vadd.f32 %v1443_v44, %v1442_v59  ;;  %v2212_v6 = vmul.f32 %v1405_v52, %v690_v22 }
 0x198   :  { %v2214_v53 = vmul.f32 %v1408_v4, %v695_v32  ;;  %v2216_v60 = vmul.f32 %v1444_v30, %v755_v3  ;;  %v705_v4 = vpop.permute.xlu1 %704  ;;  %v700_v30 = vpop.permute.xlu0 %699 }
 0x19a   :  { %v1409_v63 = vpop.f32.mrb[28].mxu0  ;;  %v1445_v8 = vpop.f32.mrb[4].mxu1 }
 0x19b   :  { %v1410_v16 = vpop.f32.mrb[29].mxu0  ;;  %v1446_v1 = vpop.f32.mrb[5].mxu1 }
 0x19c   :  { %v1411_v46 = vadd.f32 %v1410_v16, %v1409_v63  ;;  %v1447_v44 = vadd.f32 %v1446_v1, %v1445_v8  ;;  %v1412_v52 = vpop.f32.mrb[30].mxu0  ;;  %v1448_v22 = vpop.f32.mrb[6].mxu1 }
 0x19d   :  { %v1413_v32 = vpop.f32.mrb[31].mxu0  ;;  %v1449_v59 = vpop.f32.mrb[7].mxu1 }
 0x19e   :  { %v1414_v3 = vadd.f32 %v1413_v32, %v1412_v52  ;;  %v1450_v41 = vadd.f32 %v1449_v59, %v1448_v22  ;;  %v2222_v38 = vmul.f32 %v1411_v46, %v700_v30  ;;  %v2225_v57 = vmul.f32 %v1447_v44, %v2184_v54 }
 0x1a0   :  { %v2227_v34 = vmul.f32 %v1414_v3, %v705_v4  ;;  %v2230_v10 = vmul.f32 %v1450_v41, %v2186_v55 }
 0x1a2   :  { %v1415_v8 = vpop.f32.mrb[32].mxu0  ;;  %v1451_v16 = vpop.f32.mrb[8].mxu1  ;;  %v832_v1 = vpack.c.bf16 %v2230_v10, %v2225_v57 }
 0x1a3   :  { %v1416_v52 = vpop.f32.mrb[33].mxu0  ;;  %v1452_v22 = vpop.f32.mrb[9].mxu1 }
 0x1a4   :  { %v1417_v46 = vadd.f32 %v1416_v52, %v1415_v8  ;;  %v1453_v32 = vadd.f32 %v1452_v22, %v1451_v16  ;;  %v1418_v59 = vpop.f32.mrb[34].mxu0  ;;  %v1454_v54 = vpop.f32.mrb[10].mxu1 }
 0x1a5   :  { %v1419_v44 = vpop.f32.mrb[35].mxu0  ;;  %v1455_v3 = vpop.f32.mrb[11].mxu1 }
 0x1a6   :  { %v1420_v4 = vadd.f32 %v1419_v44, %v1418_v59  ;;  %v1456_v30 = vadd.f32 %v1455_v3, %v1454_v54  ;;  %v803_v55 = vmul.f32 %v1417_v46, %v2152_v15  ;;  %v815_v41 = vmul.f32 %v1453_v32, %v2200_v37 }
 0x1a7   :  { %v2399_v15 = vpack.c.bf16 %v2168_v51, %v2166_v50  ;;  %v2400_v50 = vpack.c.bf16 %v2174_v62, %v2172_v61 }
 0x1a8   :  { %v804_v63 = vmul.f32 %v1420_v4, %v2150_v12  ;;  %v816_v29 = vmul.f32 %v1456_v30, %v2202_v39 }
 0x1aa   :  { %v1421_v25 = vpop.f32.mrb[36].mxu0  ;;  %v1457_v57 = vpop.f32.mrb[12].mxu1  ;;  %v827_v10 = vpack.c.bf16 %v804_v63, %v803_v55  ;;  %v833_v21 = vpack.c.bf16 %v816_v29, %v815_v41 }
 0x1ab   :  { %v1422_v8 = vpop.f32.mrb[37].mxu0  ;;  %v1458_v16 = vpop.f32.mrb[13].mxu1 }
 0x1ac   :  { %v1423_v52 = vadd.f32 %v1422_v8, %v1421_v25  ;;  %v1459_v22 = vadd.f32 %v1458_v16, %v1457_v57  ;;  %v1424_v20 = vpop.f32.mrb[38].mxu0  ;;  %v1460_v47 = vpop.f32.mrb[14].mxu1  ;;  %1463 = vmatprep.subr.bf16.mxu1 %v827_v10  ;;  %v2401_v10 = vpack.c.bf16 %v2180_v17, %v2178_v14  ;;  %v1738_v14 = vld [vmem:[#allocation5 + $0x8] sm:$0xff]   ;;  %v2406_v17 = vpack.c.bf16 %v2214_v53, %v2212_v6  ;;  %v2415_v6 = vld [vmem:[#allocation18_spill] sm:$0xff] }
 0x1ad   :  { %v1425_v59 = vpop.f32.mrb[39].mxu0  ;;  %v1461_v54 = vpop.f32.mrb[15].mxu1  ;;  %1464 = vmatpush3.bf16.msra.mxu1 %v2399_v15  ;;  %v1752_v53 = vld [vmem:[%s2371_s0 + $0xd0] ss:$8 sps:$4 sm:$0xff]  }
 0x1ae   :  { %v1426_v12 = vadd.f32 %v1425_v59, %v1424_v20  ;;  %v1462_v37 = vadd.f32 %v1461_v54, %v1460_v47  ;;  %v805_v39 = vmul.f32 %v1423_v52, %v2154_v18  ;;  %v817_v46 = vmul.f32 %v1459_v22, %v780_v42  ;;  %v2417_v22 = vld [vmem:[#allocation20_spill] sm:$0xff]  ;;  %v2418_v59 = vld [vmem:[#allocation11_spill] sm:$0xff] }
 0x1af   :  { %v2404_v52 = vpack.c.bf16 %v2196_v35, %v2194_v33  ;;  %v1746_v33 = vld [vmem:[%s2371_s0 + $0x10] ss:$8 sps:$4 sm:$0xff]  }
 0x1b0   :  { %v806_v29 = vmul.f32 %v1426_v12, %v2156_v19  ;;  %v818_v63 = vmul.f32 %v1462_v37, %v785_v0  ;;  %v1743_v35 = vld [vmem:[#allocation5 + $0x30] sm:$0xff]  }
 0x1b2   :  { %v1427_v32 = vpop.f32.mrb[40].mxu0  ;;  %v828_v25 = vpack.c.bf16 %v806_v29, %v805_v39  ;;  %v834_v44 = vpack.c.bf16 %v818_v63, %v817_v46 }
 0x1b3   :  { %v1428_v3 = vpop.f32.mrb[41].mxu0 }
 0x1b4   :  { %v1429_v4 = vadd.f32 %v1428_v3, %v1427_v32  ;;  %v1430_v30 = vpop.f32.mrb[42].mxu0  ;;  %1465 = vmatprep.subr.bf16.mxu1 %v828_v25 }
 0x1b5   :  { %v1431_v55 = vpop.f32.mrb[43].mxu0  ;;  %1466 = vmatpush3.bf16.msra.mxu1 %v2400_v50 }
 0x1b6   :  { %v1432_v20 = vadd.f32 %v1431_v55, %v1430_v30  ;;  %v807_v47 = vmul.f32 %v1429_v4, %v2158_v26  ;;  %v2402_v26 = vpack.c.bf16 %v2190_v24, %v2188_v56  ;;  %v1739_v56 = vld [vmem:[#allocation5 + $0x10] sm:$0xff]   ;;  %v2407_v24 = vpack.c.bf16 %v2227_v34, %v2222_v38  ;;  %v2412_v34 = vld [vmem:[#allocation15_spill] sm:$0xff] }
 0x1b7   :  { %v1741_v38 = vld [vmem:[#allocation5 + $0x20] sm:$0xff]  }
 0x1b8   :  { %v808_v42 = vmul.f32 %v1432_v20, %v2160_v27  ;;  %v2403_v27 = vpack.c.bf16 %v2216_v60, %v2210_v58  ;;  %v1751_v58 = vld [vmem:[%s2371_s0 + $0xc0] ss:$8 sps:$4 sm:$0xff]  }
 0x1b9   :  { %v2416_v60 = vld [vmem:[#allocation19_spill] sm:$0xff] }
 0x1ba   :  { %v1433_v18 = vpop.f32.mrb[44].mxu0  ;;  %v829_v19 = vpack.c.bf16 %v808_v42, %v807_v47 }
 0x1bb   :  { %v1434_v51 = vpop.f32.mrb[45].mxu0 }
 0x1bc   :  { %v1435_v0 = vadd.f32 %v1434_v51, %v1433_v18  ;;  %v1436_v41 = vpop.f32.mrb[46].mxu0  ;;  %1467 = vmatprep.subr.bf16.mxu1 %v829_v19 }
 0x1bd   :  { %v1437_v57 = vpop.f32.mrb[47].mxu0  ;;  %1468 = vmatpush3.bf16.msra.mxu1 %v2401_v10 }
 0x1be   :  { %v1438_v8 = vadd.f32 %v1437_v57, %v1436_v41  ;;  %v809_v61 = vmul.f32 %v1435_v0, %v2162_v48  ;;  %v2405_v48 = vpack.c.bf16 %v2206_v2, %v2204_v23  ;;  %v1740_v23 = vld [vmem:[#allocation5 + $0x18] sm:$0xff]  }
 0x1bf   :  { %v1744_v2 = vld [vmem:[#allocation5 + $0x38] sm:$0xff]  }
 0x1c0   :  { %v810_v62 = vmul.f32 %v1438_v8, %v2164_v49  ;;  %v1737_v49 = vld [vmem:[#allocation5] sm:$0xff]  }
 0x1c1   :  { %1599 = vmatprep.subr.bf16.mxu0 %v1737_v49 }
 0x1c2   :  { %v830_v16 = vpack.c.bf16 %v810_v62, %v809_v61  ;;  %1600 = vmatpush3.bf16.msra.mxu0 %v1737_v49 }
 0x1c3   :  { %1601 = vmatprep.subr.bf16.mxu0 %v1738_v14 }
 0x1c4   :  { %1469 = vmatprep.subr.bf16.mxu1 %v830_v16 }
 0x1c5   :  { %1470 = vmatpush3.bf16.msra.mxu1 %v2402_v26 }
 0x1c6   :  { %1471 = vmatprep.subr.bf16.mxu1 %v2403_v27  ;;  %1602 = vmatpush3.bf16.msra.mxu0 %v1738_v14 }
 0x1c7   :  { %1603 = vmatprep.subr.bf16.mxu0 %v1739_v56 }
 0x1c9   :  { %1472 = vmatpush3.bf16.msra.mxu1 %v2404_v52 }
 0x1ca   :  { %1473 = vmatprep.subr.bf16.mxu1 %v832_v1  ;;  %1604 = vmatpush3.bf16.msra.mxu0 %v1739_v56  ;;  %v1753_v1 = vld [vmem:[%s2371_s0 + $0xe0] ss:$8 sps:$4 sm:$0xff]  }
 0x1cb   :  { %1605 = vmatprep.subr.bf16.mxu0 %v1740_v23 }
 0x1cd   :  { %1474 = vmatpush3.bf16.msra.mxu1 %v2405_v48 }
 0x1ce   :  { %1475 = vmatprep.subr.bf16.mxu1 %v833_v21  ;;  %v1745_v21 = vld [vmem:[%s2371_s0] ss:$8 sps:$4 sm:$0xff]   ;;  %1606 = vmatpush3.bf16.msra.mxu0 %v1740_v23 }
 0x1cf   :  { %1607 = vmatprep.subr.bf16.mxu0 %v1741_v38 }
 0x1d1   :  { %1476 = vmatpush3.bf16.msra.mxu1 %v2406_v17 }
 0x1d2   :  { %1477 = vmatprep.subr.bf16.mxu1 %v834_v44  ;;  %1608 = vmatpush3.bf16.msra.mxu0 %v1741_v38 }
 0x1d5   :  { %1478 = vmatpush3.bf16.msra.mxu1 %v2407_v24 }
 0x1d8   :  { %868 = vmatmul.mubr.bf16.vlgmr.msra.gmra.mrb[16].mxu1 %v1745_v21 }
 0x1d9   :  { %875 = vmatprep.mubr.bf16.mxu1 %v1976_v28  ;;  %v2408_v28 = vld [vmem:[#allocation21_spill] sm:$0xff] }
 0x1e0   :  { %876 = vmatmul.mubr.bf16.gmra.mrb[20].mxu1 %v1746_v33 }
 0x1e1   :  { %883 = vmatprep.mubr.bf16.mxu1 %v1987_v31  ;;  %v2409_v31 = vld [vmem:[#allocation12_spill] sm:$0xff] }
 0x1e8   :  { %884 = vmatmul.mubr.bf16.gmra.mrb[24].mxu1 %v1906_v5  ;;  %v2410_v5 = vld [vmem:[#allocation13_spill] sm:$0xff] }
 0x1e9   :  { %891 = vmatprep.mubr.bf16.mxu1 %v2000_v36  ;;  %v2413_v36 = vld [vmem:[#allocation16_spill] sm:$0xff] }
 0x1f0   :  { %892 = vmatmul.mubr.bf16.gmra.mrb[28].mxu1 %v1915_v7  ;;  %v1747_v7 = vld [vmem:[%s2371_s0 + $0x80] ss:$8 sps:$4 sm:$0xff]  }
 0x1f1   :  { %899 = vmatprep.mubr.bf16.mxu1 %v2012_v40  ;;  %v1742_v40 = vld [vmem:[#allocation5 + $0x28] sm:$0xff]  }
 0x1f2   :  { %1609 = vmatprep.subr.bf16.mxu0 %v1742_v40 }
 0x1f3   :  { %1610 = vmatpush3.bf16.msra.mxu0 %v1742_v40 }
 0x1f4   :  { %1611 = vmatprep.subr.bf16.mxu0 %v1743_v35 }
 0x1f7   :  { %1612 = vmatpush3.bf16.msra.mxu0 %v1743_v35 }
 0x1f8   :  { %900 = vmatmul.mubr.bf16.gmra.mrb[32].mxu1 %v1924_v9  ;;  %v2411_v9 = vld [vmem:[#allocation14_spill] sm:$0xff]  ;;  %1613 = vmatprep.subr.bf16.mxu0 %v1744_v2 }
 0x1f9   :  { %907 = vmatprep.mubr.bf16.mxu1 %v2024_v43  ;;  %v1750_v43 = vld [vmem:[%s2371_s0 + $0xb0] ss:$8 sps:$4 sm:$0xff]  }
 0x1fb   :  { %1614 = vmatpush3.bf16.msra.mxu0 %v1744_v2 }
 0x200   :  { %908 = vmatmul.mubr.bf16.gmra.mrb[36].mxu1 %v1933_v11  ;;  %v1748_v11 = vld [vmem:[%s2371_s0 + $0x90] ss:$8 sps:$4 sm:$0xff]  }
 0x201   :  { %915 = vmatprep.mubr.bf16.mxu1 %v2036_v45  ;;  %v2414_v45 = vld [vmem:[#allocation17_spill] sm:$0xff] }
 0x208   :  { %916 = vmatmul.mubr.bf16.gmra.mrb[40].mxu1 %v1941_v13  ;;  %v1749_v13 = vld [vmem:[%s2371_s0 + $0xa0] ss:$8 sps:$4 sm:$0xff]  }
 0x209   :  { %923 = vmatprep.mubr.bf16.mxu1 %v2408_v28 }
 0x210   :  { %924 = vmatmul.mubr.bf16.gmra.mrb[44].mxu1 %v2409_v31 }
 0x211   :  { %931 = vmatprep.mubr.bf16.mxu1 %v2410_v5 }
 0x218   :  { %932 = vmatmul.mubr.bf16.gmra.mrb[48].mxu1 %v1747_v7 }
 0x219   :  { %939 = vmatprep.mubr.bf16.mxu1 %v2411_v9 }
 0x220   :  { %940 = vmatmul.mubr.bf16.gmra.mrb[52].mxu1 %v1748_v11 }
 0x221   :  { %947 = vmatprep.mubr.bf16.mxu1 %v2412_v34 }
 0x228   :  { %948 = vmatmul.mubr.bf16.gmra.mrb[56].mxu1 %v1749_v13 }
 0x229   :  { %955 = vmatprep.mubr.bf16.mxu1 %v2413_v36 }
 0x230   :  { %956 = vmatmul.mubr.bf16.gmra.mrb[60].mxu1 %v1750_v43 }
 0x231   :  { %963 = vmatprep.mubr.bf16.mxu1 %v2414_v45 }
 0x238   :  { %964 = vmatmul.mubr.bf16.gmra.mrb[64].mxu1 %v1751_v58 }
 0x239   :  { %971 = vmatprep.mubr.bf16.mxu1 %v2415_v6 }
 0x240   :  { %972 = vmatmul.mubr.bf16.gmra.mrb[68].mxu1 %v1752_v53 }
 0x241   :  { %979 = vmatprep.mubr.bf16.mxu1 %v2416_v60 }
 0x248   :  { %980 = vmatmul.mubr.bf16.gmra.mrb[72].mxu1 %v1753_v1 }
 0x249   :  { %987 = vmatprep.mubr.bf16.mxu1 %v2417_v22 }
 0x250   :  { %988 = vmatmul.mubr.bf16.gmra.mrb[76].mxu1 %v2418_v59 }
 0x2ab   :  { %v1479_v54 = vpop.f32.mrb[16].mxu1 }
 0x2ac   :  { %v1480_v15 = vpop.f32.mrb[17].mxu1 }
 0x2ad   :  { %v1481_v12 = vadd.f32 %v1480_v15, %v1479_v54  ;;  %v1482_v37 = vpop.f32.mrb[18].mxu1 }
 0x2ae   :  { %v1483_v39 = vpop.f32.mrb[19].mxu1 }
 0x2af   :  { %v1484_v46 = vadd.f32 %v1483_v39, %v1482_v37 }
 0x2b1   :  { %v996_v29 = vpack.c.bf16 %v1484_v46, %v1481_v12 }
 0x2b3   :  { %v1485_v63 = vpop.f32.mrb[20].mxu1  ;;  %1615 = vmatprep.mubr.bf16.mxu0 %v996_v29 }
 0x2b4   :  { %v1486_v32 = vpop.f32.mrb[21].mxu1 }
 0x2b5   :  { %v1487_v25 = vadd.f32 %v1486_v32, %v1485_v63  ;;  %v1488_v44 = vpop.f32.mrb[22].mxu1 }
 0x2b6   :  { %v1489_v3 = vpop.f32.mrb[23].mxu1 }
 0x2b7   :  { %v1490_v4 = vadd.f32 %v1489_v3, %v1488_v44 }
 0x2b9   :  { %v997_v30 = vpack.c.bf16 %v1490_v4, %v1487_v25 }
 0x2bb   :  { %v1491_v55 = vpop.f32.mrb[24].mxu1  ;;  %1616 = vmatmul.mubr.bf16.vlgmr.msra.gmra.mrb[48].mxu0 %v997_v30 }
 0x2bc   :  { %v1492_v50 = vpop.f32.mrb[25].mxu1 }
 0x2bd   :  { %v1493_v20 = vadd.f32 %v1492_v50, %v1491_v55  ;;  %v1494_v47 = vpop.f32.mrb[26].mxu1 }
 0x2be   :  { %v1495_v42 = vpop.f32.mrb[27].mxu1 }
 0x2bf   :  { %v1496_v18 = vadd.f32 %v1495_v42, %v1494_v47 }
 0x2c1   :  { %v998_v19 = vpack.c.bf16 %v1496_v18, %v1493_v20 }
 0x2c3   :  { %v1497_v51 = vpop.f32.mrb[28].mxu1  ;;  %1619 = vmatprep.mubr.bf16.mxu0 %v998_v19 }
 0x2c4   :  { %v1498_v0 = vpop.f32.mrb[29].mxu1 }
 0x2c5   :  { %v1499_v41 = vadd.f32 %v1498_v0, %v1497_v51  ;;  %v1500_v57 = vpop.f32.mrb[30].mxu1 }
 0x2c6   :  { %v1501_v10 = vpop.f32.mrb[31].mxu1 }
 0x2c7   :  { %v1502_v8 = vadd.f32 %v1501_v10, %v1500_v57 }
 0x2c9   :  { %v999_v61 = vpack.c.bf16 %v1502_v8, %v1499_v41 }
 0x2cb   :  { %v1503_v62 = vpop.f32.mrb[32].mxu1  ;;  %1620 = vmatmul.mubr.bf16.gmra.mrb[52].mxu0 %v999_v61 }
 0x2cc   :  { %v1504_v16 = vpop.f32.mrb[33].mxu1 }
 0x2cd   :  { %v1505_v26 = vadd.f32 %v1504_v16, %v1503_v62  ;;  %v1506_v27 = vpop.f32.mrb[34].mxu1 }
 0x2ce   :  { %v1507_v52 = vpop.f32.mrb[35].mxu1 }
 0x2cf   :  { %v1508_v48 = vadd.f32 %v1507_v52, %v1506_v27 }
 0x2d1   :  { %v1000_v49 = vpack.c.bf16 %v1508_v48, %v1505_v26 }
 0x2d3   :  { %v1509_v14 = vpop.f32.mrb[36].mxu1  ;;  %1623 = vmatprep.mubr.bf16.mxu0 %v1000_v49 }
 0x2d4   :  { %v1510_v17 = vpop.f32.mrb[37].mxu1 }
 0x2d5   :  { %v1511_v56 = vadd.f32 %v1510_v17, %v1509_v14  ;;  %v1512_v24 = vpop.f32.mrb[38].mxu1 }
 0x2d6   :  { %v1513_v21 = vpop.f32.mrb[39].mxu1 }
 0x2d7   :  { %v1514_v23 = vadd.f32 %v1513_v21, %v1512_v24 }
 0x2d9   :  { %v1001_v33 = vpack.c.bf16 %v1514_v23, %v1511_v56 }
 0x2db   :  { %v1515_v28 = vpop.f32.mrb[40].mxu1  ;;  %1624 = vmatmul.mubr.bf16.gmra.mrb[56].mxu0 %v1001_v33 }
 0x2dc   :  { %v1516_v31 = vpop.f32.mrb[41].mxu1 }
 0x2dd   :  { %v1517_v5 = vadd.f32 %v1516_v31, %v1515_v28  ;;  %v1518_v7 = vpop.f32.mrb[42].mxu1 }
 0x2de   :  { %v1519_v9 = vpop.f32.mrb[43].mxu1 }
 0x2df   :  { %v1520_v11 = vadd.f32 %v1519_v9, %v1518_v7 }
 0x2e1   :  { %v1002_v34 = vpack.c.bf16 %v1520_v11, %v1517_v5 }
 0x2e3   :  { %v1521_v13 = vpop.f32.mrb[44].mxu1  ;;  %1627 = vmatprep.mubr.bf16.mxu0 %v1002_v34  ;;  %v2325_v34 = vld [vmem:[%s2375_s4] ss:$0 sm:$0xff]  ;;  %s1831_s4 = smov [#allocation7]  }
 0x2e4   :  { %v1522_v36 = vpop.f32.mrb[45].mxu1  ;;  %s1281_s28 = sshll.u32 %s1831_s4, 4  ;;  %s1282_s28 = int_to_ptr.vmem [resolvable:$true] %s1281_s28 }
 0x2e5   :  { %v1523_v38 = vadd.f32 %v1522_v36, %v1521_v13  ;;  %v1524_v40 = vpop.f32.mrb[46].mxu1  ;;  %s1798_s29 = scalar_lea.vmem %s1282_s28, 4096  ;;  %p1803_p3 = scmp.lt.s32.totalorder %s1282_s28, %s1282_s28 }
 0x2e6   :  { %v1525_v43 = vpop.f32.mrb[47].mxu1  ;;  %p1799_p2 = scmp.ne.s32.totalorder %s1282_s28, %s1798_s29  ;;  %p1804_p4 = scmp.lt.s32.totalorder %s1798_s29, %s1798_s29 }
 0x2e7   :  { %v1526_v45 = vadd.f32 %v1525_v43, %v1524_v40 }
 0x2e8   :  { %p1805_p5 = por %p1804_p4, %p1803_p3 }
 0x2e9   :  { %v1003_v35 = vpack.c.bf16 %v1526_v45, %v1523_v38 }
 0x2ea   :  { %p1806_p6 = pnand %p1805_p5, %p1799_p2 }
 0x2eb   :  { %v1527_v2 = vpop.f32.mrb[48].mxu1  ;;  %1628 = vmatmul.mubr.bf16.gmra.mrb[60].mxu0 %v1003_v35 }
 0x2ec   :  { %v1528_v58 = vpop.f32.mrb[49].mxu1 }
 0x2ed   :  { %v1529_v6 = vadd.f32 %v1528_v58, %v1527_v2  ;;  %v1530_v53 = vpop.f32.mrb[50].mxu1 }
 0x2ee   :  { %v1531_v60 = vpop.f32.mrb[51].mxu1 }
 0x2ef   :  { %v1532_v1 = vadd.f32 %v1531_v60, %v1530_v53 }
 0x2f1   :  { %v1004_v22 = vpack.c.bf16 %v1532_v1, %v1529_v6 }
 0x2f3   :  { %v1533_v59 = vpop.f32.mrb[52].mxu1  ;;  %1631 = vmatprep.mubr.bf16.mxu0 %v1004_v22 }
 0x2f4   :  { %v1534_v54 = vpop.f32.mrb[53].mxu1 }
 0x2f5   :  { %v1535_v15 = vadd.f32 %v1534_v54, %v1533_v59  ;;  %v1536_v12 = vpop.f32.mrb[54].mxu1 }
 0x2f6   :  { %v1537_v37 = vpop.f32.mrb[55].mxu1 }
 0x2f7   :  { %v1538_v39 = vadd.f32 %v1537_v37, %v1536_v12 }
 0x2f9   :  { %v1005_v46 = vpack.c.bf16 %v1538_v39, %v1535_v15 }
 0x2fb   :  { %v1539_v29 = vpop.f32.mrb[56].mxu1  ;;  %1632 = vmatmul.mubr.bf16.gmra.mrb[64].mxu0 %v1005_v46 }
 0x2fc   :  { %v1540_v63 = vpop.f32.mrb[57].mxu1 }
 0x2fd   :  { %v1541_v32 = vadd.f32 %v1540_v63, %v1539_v29  ;;  %v1542_v25 = vpop.f32.mrb[58].mxu1 }
 0x2fe   :  { %v1543_v44 = vpop.f32.mrb[59].mxu1 }
 0x2ff   :  { %v1544_v3 = vadd.f32 %v1543_v44, %v1542_v25 }
 0x301   :  { %v1006_v4 = vpack.c.bf16 %v1544_v3, %v1541_v32 }
 0x303   :  { %v1545_v30 = vpop.f32.mrb[60].mxu1  ;;  %1635 = vmatprep.mubr.bf16.mxu0 %v1006_v4 }
 0x304   :  { %v1546_v55 = vpop.f32.mrb[61].mxu1 }
 0x305   :  { %v1547_v50 = vadd.f32 %v1546_v55, %v1545_v30  ;;  %v1548_v20 = vpop.f32.mrb[62].mxu1 }
 0x306   :  { %v1549_v47 = vpop.f32.mrb[63].mxu1 }
 0x307   :  { %v1550_v42 = vadd.f32 %v1549_v47, %v1548_v20 }
 0x309   :  { %v1007_v18 = vpack.c.bf16 %v1550_v42, %v1547_v50 }
 0x30b   :  { %v1551_v19 = vpop.f32.mrb[64].mxu1  ;;  %1636 = vmatmul.mubr.bf16.gmra.mrb[68].mxu0 %v1007_v18 }
 0x30c   :  { %v1552_v51 = vpop.f32.mrb[65].mxu1 }
 0x30d   :  { %v1553_v0 = vadd.f32 %v1552_v51, %v1551_v19  ;;  %v1554_v41 = vpop.f32.mrb[66].mxu1 }
 0x30e   :  { %v1555_v57 = vpop.f32.mrb[67].mxu1 }
 0x30f   :  { %v1556_v10 = vadd.f32 %v1555_v57, %v1554_v41 }
 0x311   :  { %v1008_v8 = vpack.c.bf16 %v1556_v10, %v1553_v0 }
 0x313   :  { %v1557_v61 = vpop.f32.mrb[68].mxu1  ;;  %1639 = vmatprep.mubr.bf16.mxu0 %v1008_v8 }
 0x314   :  { %v1558_v62 = vpop.f32.mrb[69].mxu1 }
 0x315   :  { %v1559_v16 = vadd.f32 %v1558_v62, %v1557_v61  ;;  %v1560_v26 = vpop.f32.mrb[70].mxu1 }
 0x316   :  { %v1561_v27 = vpop.f32.mrb[71].mxu1 }
 0x317   :  { %v1562_v52 = vadd.f32 %v1561_v27, %v1560_v26 }
 0x319   :  { %v1009_v48 = vpack.c.bf16 %v1562_v52, %v1559_v16 }
 0x31b   :  { %v1563_v49 = vpop.f32.mrb[72].mxu1  ;;  %1640 = vmatmul.mubr.bf16.gmra.mrb[72].mxu0 %v1009_v48 }
 0x31c   :  { %v1564_v14 = vpop.f32.mrb[73].mxu1 }
 0x31d   :  { %v1565_v17 = vadd.f32 %v1564_v14, %v1563_v49  ;;  %v1566_v56 = vpop.f32.mrb[74].mxu1 }
 0x31e   :  { %v1567_v24 = vpop.f32.mrb[75].mxu1 }
 0x31f   :  { %v1568_v21 = vadd.f32 %v1567_v24, %v1566_v56 }
 0x321   :  { %v1010_v23 = vpack.c.bf16 %v1568_v21, %v1565_v17 }
 0x323   :  { %v1569_v33 = vpop.f32.mrb[76].mxu1  ;;  %1643 = vmatprep.mubr.bf16.mxu0 %v1010_v23 }
 0x324   :  { %v1570_v28 = vpop.f32.mrb[77].mxu1 }
 0x325   :  { %v1571_v31 = vadd.f32 %v1570_v28, %v1569_v33  ;;  %v1572_v5 = vpop.f32.mrb[78].mxu1 }
 0x326   :  { %v1573_v7 = vpop.f32.mrb[79].mxu1 }
 0x327   :  { %v1574_v9 = vadd.f32 %v1573_v7, %v1572_v5 }
 0x329   :  { %v1011_v11 = vpack.c.bf16 %v1574_v9, %v1571_v31 }
 0x32b   :  { %1644 = vmatmul.mubr.bf16.gmra.mrb[76].mxu0 %v1011_v11 }
 0x38e   :  { %v1617_v13 = vpop.f32.mrb[48].mxu0 }
 0x38f   :  { %v1126_v36 = vadd.f32 %v1617_v13, %v2325_v34  ;;  %v1117_v38 = vpop.f32.mrb[49].mxu0 }
 0x390   :  { %v1118_v40 = vadd.f32 %v2325_v34, %v1117_v38  ;;  %v1618_v43 = vpop.f32.mrb[50].mxu0 }
 0x391   :  { %1246 = vst [vmem:[#allocation7 + $0x10] sm:$0xff] %v1126_v36  ;;  %v1129_v45 = vadd.f32 %v1618_v43, %v2325_v34  ;;  %v1120_v35 = vpop.f32.mrb[51].mxu0 }
 0x392   :  { %1244 = vst [vmem:[#allocation7] sm:$0xff] %v1118_v40  ;;  %v1121_v2 = vadd.f32 %v2325_v34, %v1120_v35 }
 0x393   :  { %1247 = vst [vmem:[#allocation7 + $0x18] sm:$0xff] %v1129_v45 }
 0x394   :  { %1245 = vst [vmem:[#allocation7 + $0x8] sm:$0xff] %v1121_v2 }
 0x39e   :  { %v1621_v58 = vpop.f32.mrb[52].mxu0 }
 0x39f   :  { %v1142_v6 = vadd.f32 %v1621_v58, %v2325_v34  ;;  %v1133_v53 = vpop.f32.mrb[53].mxu0 }
 0x3a0   :  { %v1134_v60 = vadd.f32 %v2325_v34, %v1133_v53  ;;  %v1622_v1 = vpop.f32.mrb[54].mxu0 }
 0x3a1   :  { %1250 = vst [vmem:[#allocation7 + $0x30] sm:$0xff] %v1142_v6  ;;  %v1145_v22 = vadd.f32 %v1622_v1, %v2325_v34  ;;  %v1136_v59 = vpop.f32.mrb[55].mxu0 }
 0x3a2   :  { %1248 = vst [vmem:[#allocation7 + $0x20] sm:$0xff] %v1134_v60  ;;  %v1137_v54 = vadd.f32 %v2325_v34, %v1136_v59 }
 0x3a3   :  { %1251 = vst [vmem:[#allocation7 + $0x38] sm:$0xff] %v1145_v22 }
 0x3a4   :  { %1249 = vst [vmem:[#allocation7 + $0x28] sm:$0xff] %v1137_v54 }
 0x3ae   :  { %v1625_v15 = vpop.f32.mrb[56].mxu0 }
 0x3af   :  { %v1158_v12 = vadd.f32 %v1625_v15, %v2325_v34  ;;  %v1149_v37 = vpop.f32.mrb[57].mxu0 }
 0x3b0   :  { %v1150_v39 = vadd.f32 %v2325_v34, %v1149_v37  ;;  %v1626_v46 = vpop.f32.mrb[58].mxu0 }
 0x3b1   :  { %1254 = vst [vmem:[#allocation7 + $0x50] sm:$0xff] %v1158_v12  ;;  %v1161_v29 = vadd.f32 %v1626_v46, %v2325_v34  ;;  %v1152_v63 = vpop.f32.mrb[59].mxu0 }
 0x3b2   :  { %1252 = vst [vmem:[#allocation7 + $0x40] sm:$0xff] %v1150_v39  ;;  %v1153_v32 = vadd.f32 %v2325_v34, %v1152_v63 }
 0x3b3   :  { %1255 = vst [vmem:[#allocation7 + $0x58] sm:$0xff] %v1161_v29 }
 0x3b4   :  { %1253 = vst [vmem:[#allocation7 + $0x48] sm:$0xff] %v1153_v32 }
 0x3be   :  { %v1629_v25 = vpop.f32.mrb[60].mxu0 }
 0x3bf   :  { %v1174_v44 = vadd.f32 %v1629_v25, %v2325_v34  ;;  %v1165_v3 = vpop.f32.mrb[61].mxu0 }
 0x3c0   :  { %v1166_v4 = vadd.f32 %v2325_v34, %v1165_v3  ;;  %v1630_v30 = vpop.f32.mrb[62].mxu0 }
 0x3c1   :  { %1258 = vst [vmem:[#allocation7 + $0x70] sm:$0xff] %v1174_v44  ;;  %v1177_v55 = vadd.f32 %v1630_v30, %v2325_v34  ;;  %v1168_v50 = vpop.f32.mrb[63].mxu0 }
 0x3c2   :  { %1256 = vst [vmem:[#allocation7 + $0x60] sm:$0xff] %v1166_v4  ;;  %v1169_v20 = vadd.f32 %v2325_v34, %v1168_v50 }
 0x3c3   :  { %1259 = vst [vmem:[#allocation7 + $0x78] sm:$0xff] %v1177_v55 }
 0x3c4   :  { %1257 = vst [vmem:[#allocation7 + $0x68] sm:$0xff] %v1169_v20 }
 0x3ce   :  { %v1633_v47 = vpop.f32.mrb[64].mxu0 }
 0x3cf   :  { %v1190_v42 = vadd.f32 %v1633_v47, %v2325_v34  ;;  %v1181_v18 = vpop.f32.mrb[65].mxu0 }
 0x3d0   :  { %v1182_v19 = vadd.f32 %v2325_v34, %v1181_v18  ;;  %v1634_v51 = vpop.f32.mrb[66].mxu0 }
 0x3d1   :  { %1262 = vst [vmem:[#allocation7 + $0x90] sm:$0xff] %v1190_v42  ;;  %v1193_v0 = vadd.f32 %v1634_v51, %v2325_v34  ;;  %v1184_v41 = vpop.f32.mrb[67].mxu0 }
 0x3d2   :  { %1260 = vst [vmem:[#allocation7 + $0x80] sm:$0xff] %v1182_v19  ;;  %v1185_v57 = vadd.f32 %v2325_v34, %v1184_v41 }
 0x3d3   :  { %1263 = vst [vmem:[#allocation7 + $0x98] sm:$0xff] %v1193_v0 }
 0x3d4   :  { %1261 = vst [vmem:[#allocation7 + $0x88] sm:$0xff] %v1185_v57 }
 0x3de   :  { %v1637_v10 = vpop.f32.mrb[68].mxu0 }
 0x3df   :  { %v1206_v8 = vadd.f32 %v1637_v10, %v2325_v34  ;;  %v1197_v61 = vpop.f32.mrb[69].mxu0 }
 0x3e0   :  { %v1198_v62 = vadd.f32 %v2325_v34, %v1197_v61  ;;  %v1638_v16 = vpop.f32.mrb[70].mxu0 }
 0x3e1   :  { %1266 = vst [vmem:[#allocation7 + $0xb0] sm:$0xff] %v1206_v8  ;;  %v1209_v26 = vadd.f32 %v1638_v16, %v2325_v34  ;;  %v1200_v27 = vpop.f32.mrb[71].mxu0 }
 0x3e2   :  { %1264 = vst [vmem:[#allocation7 + $0xa0] sm:$0xff] %v1198_v62  ;;  %v1201_v52 = vadd.f32 %v2325_v34, %v1200_v27 }
 0x3e3   :  { %1267 = vst [vmem:[#allocation7 + $0xb8] sm:$0xff] %v1209_v26 }
 0x3e4   :  { %1265 = vst [vmem:[#allocation7 + $0xa8] sm:$0xff] %v1201_v52 }
 0x3ee   :  { %v1641_v48 = vpop.f32.mrb[72].mxu0 }
 0x3ef   :  { %v1222_v49 = vadd.f32 %v1641_v48, %v2325_v34  ;;  %v1213_v14 = vpop.f32.mrb[73].mxu0 }
 0x3f0   :  { %v1214_v17 = vadd.f32 %v2325_v34, %v1213_v14  ;;  %v1642_v56 = vpop.f32.mrb[74].mxu0 }
 0x3f1   :  { %1270 = vst [vmem:[#allocation7 + $0xd0] sm:$0xff] %v1222_v49  ;;  %v1225_v24 = vadd.f32 %v1642_v56, %v2325_v34  ;;  %v1216_v21 = vpop.f32.mrb[75].mxu0 }
 0x3f2   :  { %1268 = vst [vmem:[#allocation7 + $0xc0] sm:$0xff] %v1214_v17  ;;  %v1217_v23 = vadd.f32 %v2325_v34, %v1216_v21 }
 0x3f3   :  { %1271 = vst [vmem:[#allocation7 + $0xd8] sm:$0xff] %v1225_v24 }
 0x3f4   :  { %1269 = vst [vmem:[#allocation7 + $0xc8] sm:$0xff] %v1217_v23 }
 0x3fe   :  { %v1645_v33 = vpop.f32.mrb[76].mxu0 }
 0x3ff   :  { %v1238_v28 = vadd.f32 %v1645_v33, %v2325_v34  ;;  %v1229_v31 = vpop.f32.mrb[77].mxu0 }
 0x400   :  { %v1230_v5 = vadd.f32 %v2325_v34, %v1229_v31  ;;  %v1646_v7 = vpop.f32.mrb[78].mxu0 }
 0x401   :  { %1274 = vst [vmem:[#allocation7 + $0xf0] sm:$0xff] %v1238_v28  ;;  %v1241_v9 = vadd.f32 %v1646_v7, %v2325_v34  ;;  %v1232_v11 = vpop.f32.mrb[79].mxu0 }
 0x402   :  { %1272 = vst [vmem:[#allocation7 + $0xe0] sm:$0xff] %v1230_v5  ;;  %v1233_v13 = vadd.f32 %v2325_v34, %v1232_v11 }
 0x403   :  { %1275 = vst [vmem:[#allocation7 + $0xf8] sm:$0xff] %v1241_v9 }
 0x404   :  { %1273 = vst [vmem:[#allocation7 + $0xe8] sm:$0xff] %v1233_v13 }
 0x405   :  { %1809 = shalt.err (!%p1806_p6)
}
 0x406   :  { %s1810_s7 = scalar_lea.hbm %s2376_s5, 4096 }
 0x407   :  { %p1811_p7 = scmp.ne.s32.totalorder %s2376_s5, %s1810_s7  ;;  %p1814_p8 = scmp.lt.u32.totalorder %s1810_s7, %s2376_s5 }
 0x409   :  { %p1816_p9 = pnand %p1814_p8, %p1811_p7 }
 0x40b   :  { %1819 = shalt.err (!%p1816_p9)
}
 0x40c   :  { %s1832_s2 = smov 128   ;;  %s1833_s12 = smov 8  }
 0x40d   :  { %1287 = dma.vmem_to_hbm [thread:$0]  %s1282_s28, 4096, %s2376_s5, [#allocation4], %s1832_s2, %s1832_s2, %s1833_s12  }
 0x40e   :  { %1824 = dma.done.wait [#allocation4], 4096  }
 0x40f   :  { %1825 = vsyncadd [#allocation4], 4294963200 }
 0x410   :  { %1291 = vsyncpa [#allocation3], 1 }
 0x411   :  { %1292 = vsyncpa [#allocation6], 1 }
 0x412   :  { %1293 = vsyncpa [#allocation4], 1 }

</bundles_post_ra>
